<compile_context>
chip_gen: v7x
topology: tpu7x:2x2x1
jax: 0.10.0
libtpu: 0.0.40
codegen_flags: <defaults>
</compile_context>

<pallas_src>
import functools

import jax
import jax.numpy as jnp
from jax.experimental import pallas as pl
from jax.experimental.pallas import tpu as pltpu


# ----------------------------- model dimensions -----------------------------

PATCH = 8
HIDDEN = 32
HEADS = 2
MLP = 64
LAYERS = 2
CLASSES = 8
LANES = 128


# ------------------------------ kernel helpers ------------------------------


def _gelu_tanh(x):
    # tanh-approx GELU (matches the synthetic reference model).
    c = 0.7978845608028654  # sqrt(2/pi)
    return 0.5 * x * (1.0 + jnp.tanh(c * (x + 0.044715 * x * x * x)))


def _layernorm(x, g, b, eps):
    mean = jnp.mean(x, axis=-1, keepdims=True)
    var = jnp.mean(jnp.square(x - mean), axis=-1, keepdims=True)
    return (x - mean) * jax.lax.rsqrt(var + eps) * g + b


# ----------------------------- fused ViT kernel -----------------------------


def _vit_fused_kernel(tok_ref, base_ref, wslab_ref, vslab_ref, o_ref,
                      *, n_layers, n_heads, batch, seq_pad, seq_valid, eps,
                      w_off, v_off):
    """Single invocation: whole batch, all layers, everything in VMEM/vregs."""
    D = base_ref.shape[1]
    hd = D // n_heads
    scale = 1.0 / float(hd) ** 0.5

    # One tiny load of all biases / LN params; everything else is value slices.
    vs = vslab_ref[...]                                       # (n_vec, 128)

    def W(name):                                              # weight window
        r, nr, nc = w_off[name]
        return wslab_ref[r:r + nr, 0:nc]

    def V(name):                                              # (1, nc) vector
        r, nc = v_off[name]
        return vs[r:r + 1, 0:nc]

    # --- patch embedding + CLS + positional embeddings (all images at once) ---
    # tok rows per image: [zero CLS slot, patches..., zero padding]
    # base rows: [cls + pos0 - patch_b, pos1.., -patch_b padding]
    # so  h = tok @ W + patch_b + base  gives [cls+pos0, patch_emb+pos, 0...].
    base_all = jnp.concatenate([base_ref[...]] * batch, axis=0)   # (B*S_pad, D)
    h = jnp.dot(tok_ref[...], W("patch_w"), preferred_element_type=jnp.float32)
    h = h + V("patch_b") + base_all

    # valid-key mask inside each image's (S_pad, S_pad) score tile
    key_valid = jax.lax.broadcasted_iota(jnp.int32, (seq_pad, seq_pad), 1) < seq_valid

    for li in range(n_layers):
        # ---------- attention (pre-LN): fused QKV + fused projection ----------
        x2 = _layernorm(h, V(f"ln1g{li}"), V(f"ln1b{li}"), eps)
        qkv = jnp.dot(x2, W(f"qkvw{li}"),
                      preferred_element_type=jnp.float32) + V(f"qkvb{li}")   # (B*S_pad, 3D)
        ctx_imgs = []
        for img in range(batch):
            qkv_i = qkv[img * seq_pad:(img + 1) * seq_pad, :]                # (S_pad, 3D)
            ctx_heads = []
            for hh in range(n_heads):
                q = qkv_i[:, hh * hd:(hh + 1) * hd]
                k = qkv_i[:, D + hh * hd:D + (hh + 1) * hd]
                v = qkv_i[:, 2 * D + hh * hd:2 * D + (hh + 1) * hd]
                # QK^T without materializing a transpose: contract last axes.
                s = jax.lax.dot_general(
                    q, k, (((1,), (1,)), ((), ())),
                    preferred_element_type=jnp.float32) * scale              # (S_pad, S_pad)
                s = jnp.where(key_valid, s, -1e30)
                s = s - jnp.max(s, axis=-1, keepdims=True)
                p = jnp.exp(s)
                p = p / jnp.sum(p, axis=-1, keepdims=True)     # exact divide (parity)
                ctx_heads.append(jnp.dot(p, v, preferred_element_type=jnp.float32))
            ctx_imgs.append(jnp.concatenate(ctx_heads, axis=-1))             # (S_pad, D)
        ctx = jnp.concatenate(ctx_imgs, axis=0)                              # (B*S_pad, D)
        att = jnp.dot(ctx, W(f"projw{li}"),
                      preferred_element_type=jnp.float32) + V(f"projb{li}")
        h = h + att

        # ------------------------- MLP block (pre-LN) -------------------------
        x3 = _layernorm(h, V(f"ln2g{li}"), V(f"ln2b{li}"), eps)
        m = _gelu_tanh(jnp.dot(x3, W(f"fc1w{li}"),
                               preferred_element_type=jnp.float32) + V(f"fc1b{li}"))
        h = h + jnp.dot(m, W(f"fc2w{li}"),
                        preferred_element_type=jnp.float32) + V(f"fc2b{li}")

    # --- final LN + classifier on CLS rows only (id2label folded into head) ---
    cls = jnp.concatenate(
        [h[img * seq_pad:img * seq_pad + 1, :] for img in range(batch)], axis=0)  # (B, D)
    cls = _layernorm(cls, V("lnfg"), V("lnfb"), eps)
    logits = jnp.dot(cls, W("headw"), preferred_element_type=jnp.float32) + V("headb")
    o_ref[...] = logits.astype(o_ref.dtype)                   # one dense (B, CLASSES) store


# ------------------------- synthetic ViT parameters ------------------------


def init_params(key, in_chans, n_patches):
    patch_dim = in_chans * PATCH * PATCH
    seq_len = n_patches + 1

    def dense(k, fan_in, fan_out):
        kw, kb = jax.random.split(k)
        w = jax.random.normal(kw, (fan_in, fan_out), jnp.float32) * (fan_in ** -0.5)
        b = jax.random.normal(kb, (fan_out,), jnp.float32) * 0.02
        return w, b

    keys = jax.random.split(key, 5 + LAYERS)
    params = {}
    # Conv2d(in_chans, HIDDEN, kernel=stride=PATCH) as a matmul over flattened
    # (C, p, p) patches — same op as the PyTorch patch-embedding conv.
    params["patch_w"], params["patch_b"] = dense(keys[0], patch_dim, HIDDEN)
    params["cls"] = jax.random.normal(keys[1], (1, 1, HIDDEN), jnp.float32) * 0.02
    params["pos"] = jax.random.normal(keys[4], (1, seq_len, HIDDEN), jnp.float32) * 0.02
    params["layers"] = []
    for li in range(LAYERS):
        lk = jax.random.split(keys[5 + li], 8)
        layer = {
            "ln1_g": jnp.ones((HIDDEN,), jnp.float32),
            "ln1_b": jnp.zeros((HIDDEN,), jnp.float32),
            "qkv": dense(lk[0], HIDDEN, 3 * HIDDEN),
            "proj": dense(lk[1], HIDDEN, HIDDEN),
            "ln2_g": jnp.ones((HIDDEN,), jnp.float32),
            "ln2_b": jnp.zeros((HIDDEN,), jnp.float32),
            "fc1": dense(lk[2], HIDDEN, MLP),
            "fc2": dense(lk[3], MLP, HIDDEN),
        }
        params["layers"].append(layer)
    params["lnf_g"] = jnp.ones((HIDDEN,), jnp.float32)
    params["lnf_b"] = jnp.zeros((HIDDEN,), jnp.float32)
    params["head"] = dense(keys[2], HIDDEN, CLASSES)
    return params


# ------------------ host-side slab packing (layout plumbing) ----------------


def _pack_slabs(params, id2label):
    """Pack all matmul weights into one (rows,128) slab and all biases / LN
    params into one (n_vec,128) slab.  Returns slabs + static offset tables."""
    head_w, head_b = params["head"]
    # fold id2label permutation: out[:, j] = logits[:, id2label[j]]
    head_w = jnp.take(head_w, id2label, axis=1)
    head_b = jnp.take(head_b, id2label, axis=0)

    w_entries = [("patch_w", params["patch_w"])]
    v_entries = [("patch_b", params["patch_b"])]
    for li, layer in enumerate(params["layers"]):
        qkv_w, qkv_b = layer["qkv"]
        proj_w, proj_b = layer["proj"]
        f1w, f1b = layer["fc1"]
        f2w, f2b = layer["fc2"]
        w_entries += [(f"qkvw{li}", qkv_w), (f"projw{li}", proj_w),
                      (f"fc1w{li}", f1w), (f"fc2w{li}", f2w)]
        v_entries += [(f"ln1g{li}", layer["ln1_g"]), (f"ln1b{li}", layer["ln1_b"]),
                      (f"qkvb{li}", qkv_b), (f"projb{li}", proj_b),
                      (f"ln2g{li}", layer["ln2_g"]), (f"ln2b{li}", layer["ln2_b"]),
                      (f"fc1b{li}", f1b), (f"fc2b{li}", f2b)]
    w_entries.append(("headw", head_w))
    v_entries += [("lnfg", params["lnf_g"]), ("lnfb", params["lnf_b"]),
                  ("headb", head_b)]

    w_off, w_rows, r = {}, [], 0
    for name, w in w_entries:
        nr, nc = w.shape
        w_off[name] = (r, nr, nc)            # row starts are all multiples of 8
        w_rows.append(jnp.pad(w, ((0, 0), (0, LANES - nc))))
        r += nr
    wslab = jnp.concatenate(w_rows, axis=0)  # (608, 128) f32 ~ 311 KiB

    v_off, v_rows = {}, []
    for i, (name, vec) in enumerate(v_entries):
        nc = vec.shape[0]
        v_off[name] = (i, nc)
        v_rows.append(jnp.pad(vec, (0, LANES - nc))[None, :])
    vslab = jnp.concatenate(v_rows, axis=0)  # (20, 128)

    return wslab, vslab, w_off, v_off


# ------------------------------- forward pass ------------------------------


def vit_return_wrapper_forward(x, params, id2label):
    """Equivalent of ViTReturnWrapper.forward.

    x: (B, C, H, W) float32, NCHW.  Returns permuted logits (B, CLASSES).
    """
    B, C, H, W = x.shape
    p = PATCH
    nh, nw = H // p, W // p
    n_patches = nh * nw
    S = n_patches + 1
    S_pad = ((S + 7) // 8) * 8               # sublane-align the per-image sequence
    D = HIDDEN
    patch_dim = C * p * p

    # --- patch extraction (layout plumbing), images stacked along sublanes ---
    patches = x.reshape(B, C, nh, p, nw, p).transpose(0, 2, 4, 1, 3, 5)
    patches = patches.reshape(B, n_patches, patch_dim)
    tok = jnp.zeros((B, S_pad, patch_dim), jnp.float32)
    tok = tok.at[:, 1:1 + n_patches, :].set(patches)   # row 0 per image = CLS slot
    tok = tok.reshape(B * S_pad, patch_dim)            # (B*S_pad, patch_dim)

    # --- base rows so that tok @ W + patch_b + base == [cls+pos0, emb+pos, 0..] ---
    pos = params["pos"][0]                   # (S, D)
    patch_b = params["patch_b"]              # (D,)
    cls = params["cls"].reshape(D)
    base = jnp.zeros((S_pad, D), jnp.float32)
    base = base.at[0].set(cls + pos[0] - patch_b)
    base = base.at[1:S].set(pos[1:S])
    if S_pad > S:
        base = base.at[S:].set(-patch_b)     # padded rows start exactly at zero
    # NOTE: not broadcast to B on the host — replicated inside the kernel.

    wslab, vslab, w_off, v_off = _pack_slabs(params, id2label)

    kernel = functools.partial(
        _vit_fused_kernel,
        n_layers=LAYERS, n_heads=HEADS, batch=B, seq_pad=S_pad,
        seq_valid=S, eps=1e-12, w_off=w_off, v_off=v_off)

    vmem = pltpu.MemorySpace.VMEM
    out = pl.pallas_call(
        kernel,
        out_shape=jax.ShapeDtypeStruct((B, CLASSES), jnp.float32),
        in_specs=[pl.BlockSpec(memory_space=vmem)] * 4,
        out_specs=pl.BlockSpec(memory_space=vmem),
    )(tok, base, wslab, vslab)

    return out


# ----------------------------------- main -----------------------------------

if __name__ == "__main__":
    key = jax.random.PRNGKey(0)
    kparam, kinput = jax.random.split(key)

    B, C, H, W = 2, 4, 16, 16
    n_patches = (H // PATCH) * (W // PATCH)
    params = init_params(kparam, C, n_patches)

    x = jax.random.normal(kinput, (B, C, H, W), jnp.float32)
    id2label = jnp.array([3, 1, 4, 0, 5, 2, 7, 6], dtype=jnp.int32)

    fwd = jax.jit(vit_return_wrapper_forward)
    logits = fwd(x, params, id2label)
    jax.block_until_ready(logits)
    assert logits.shape == (B, CLASSES) and logits.dtype == jnp.float32
    print("KERNEL_OK")
</pallas_src>

<mosaic_0001>
module attributes {stable_mosaic.version = 11 : i64} {
  func.func @_vit_fused_kernel(%arg0: memref<16x256xf32, #tpu.memory_space<vmem>>, %arg1: memref<8x32xf32, #tpu.memory_space<vmem>>, %arg2: memref<608x128xf32, #tpu.memory_space<vmem>>, %arg3: memref<20x128xf32, #tpu.memory_space<vmem>>, %arg4: memref<2x8xf32, #tpu.memory_space<vmem>>) attributes {dimension_semantics = [], scalar_prefetch = 0 : i64, scratch_operands = 0 : i64, tpu.core_type = #tpu.core_type<tc>} {
    %c0 = arith.constant 0 : index
    %c0_0 = arith.constant 0 : index
    %0 = vector.load %arg3[%c0, %c0_0] : memref<20x128xf32, #tpu.memory_space<vmem>>, vector<20x128xf32>
    %c0_1 = arith.constant 0 : index
    %c0_2 = arith.constant 0 : index
    %1 = vector.load %arg1[%c0_1, %c0_2] : memref<8x32xf32, #tpu.memory_space<vmem>>, vector<8x32xf32>
    %2 = tpu.concatenate %1, %1 in 0 : vector<8x32xf32>, vector<8x32xf32> -> vector<16x32xf32>
    %c0_3 = arith.constant 0 : index
    %c0_4 = arith.constant 0 : index
    %3 = vector.load %arg0[%c0_3, %c0_4] : memref<16x256xf32, #tpu.memory_space<vmem>>, vector<16x256xf32>
    %c0_5 = arith.constant 0 : index
    %c0_6 = arith.constant 0 : index
    %4 = vector.load %arg2[%c0_5, %c0_6] : memref<608x128xf32, #tpu.memory_space<vmem>>, vector<256x32xf32>
    %cst = arith.constant dense<0.000000e+00> : vector<16x32xf32>
    %5 = tpu.matmul %3, %4, %cst {dimension_numbers = #tpu.dot_dimension_numbers<[1], [0], [0], [1], [0, 0, 1, 1], [], []>} : vector<16x256xf32>, vector<256x32xf32>, vector<16x32xf32> -> vector<16x32xf32>
    %6 = vector.extract_strided_slice %0 {offsets = [0, 0], sizes = [1, 32], strides = [1, 1]} : vector<20x128xf32> to vector<1x32xf32>
    %7 = vector.broadcast %6 : vector<1x32xf32> to vector<16x32xf32>
    %8 = arith.addf %5, %7 : vector<16x32xf32>
    %9 = arith.addf %8, %2 : vector<16x32xf32>
    %10 = tpu.iota {dimensions = array<i32: 1>} : vector<8x8xi32>
    %c5_i32 = arith.constant 5 : i32
    %11 = vector.broadcast %c5_i32 : i32 to vector<8x8xi32>
    %12 = arith.cmpi slt, %10, %11 : vector<8x8xi32>
    %13 = vector.extract_strided_slice %0 {offsets = [1, 0], sizes = [1, 32], strides = [1, 1]} : vector<20x128xf32> to vector<1x32xf32>
    %14 = vector.extract_strided_slice %0 {offsets = [2, 0], sizes = [1, 32], strides = [1, 1]} : vector<20x128xf32> to vector<1x32xf32>
    %cst_7 = arith.constant dense<0.000000e+00> : vector<16xf32>
    %15 = vector.multi_reduction <add>, %9, %cst_7 [1] : vector<16x32xf32> to vector<16xf32>
    %16 = vector.shape_cast %15 : vector<16xf32> to vector<16x1xf32>
    %cst_8 = arith.constant 3.200000e+01 : f32
    %17 = vector.broadcast %cst_8 : f32 to vector<16x1xf32>
    %18 = arith.divf %16, %17 : vector<16x1xf32>
    %19 = vector.broadcast %18 : vector<16x1xf32> to vector<16x32xf32>
    %20 = arith.subf %9, %19 : vector<16x32xf32>
    %21 = arith.mulf %20, %20 : vector<16x32xf32>
    %cst_9 = arith.constant dense<0.000000e+00> : vector<16xf32>
    %22 = vector.multi_reduction <add>, %21, %cst_9 [1] : vector<16x32xf32> to vector<16xf32>
    %23 = vector.shape_cast %22 : vector<16xf32> to vector<16x1xf32>
    %cst_10 = arith.constant 3.200000e+01 : f32
    %24 = vector.broadcast %cst_10 : f32 to vector<16x1xf32>
    %25 = arith.divf %23, %24 : vector<16x1xf32>
    %26 = vector.broadcast %18 : vector<16x1xf32> to vector<16x32xf32>
    %27 = arith.subf %9, %26 : vector<16x32xf32>
    %cst_11 = arith.constant 9.99999996E-13 : f32
    %28 = vector.broadcast %cst_11 : f32 to vector<16x1xf32>
    %29 = arith.addf %25, %28 : vector<16x1xf32>
    %30 = math.rsqrt %29 : vector<16x1xf32>
    %31 = vector.broadcast %30 : vector<16x1xf32> to vector<16x32xf32>
    %32 = arith.mulf %27, %31 : vector<16x32xf32>
    %33 = vector.broadcast %13 : vector<1x32xf32> to vector<16x32xf32>
    %34 = arith.mulf %32, %33 : vector<16x32xf32>
    %35 = vector.broadcast %14 : vector<1x32xf32> to vector<16x32xf32>
    %36 = arith.addf %34, %35 : vector<16x32xf32>
    %c256 = arith.constant 256 : index
    %c0_12 = arith.constant 0 : index
    %37 = vector.load %arg2[%c256, %c0_12] : memref<608x128xf32, #tpu.memory_space<vmem>>, vector<32x96xf32>
    %cst_13 = arith.constant dense<0.000000e+00> : vector<16x96xf32>
    %38 = tpu.matmul %36, %37, %cst_13 {dimension_numbers = #tpu.dot_dimension_numbers<[1], [0], [0], [1], [0, 0, 1, 1], [], []>} : vector<16x32xf32>, vector<32x96xf32>, vector<16x96xf32> -> vector<16x96xf32>
    %39 = vector.extract_strided_slice %0 {offsets = [3, 0], sizes = [1, 96], strides = [1, 1]} : vector<20x128xf32> to vector<1x96xf32>
    %40 = vector.broadcast %39 : vector<1x96xf32> to vector<16x96xf32>
    %41 = arith.addf %38, %40 : vector<16x96xf32>
    %42 = vector.extract_strided_slice %41 {offsets = [0, 0], sizes = [8, 96], strides = [1, 1]} : vector<16x96xf32> to vector<8x96xf32>
    %43 = vector.extract_strided_slice %42 {offsets = [0, 0], sizes = [8, 16], strides = [1, 1]} : vector<8x96xf32> to vector<8x16xf32>
    %44 = vector.extract_strided_slice %42 {offsets = [0, 32], sizes = [8, 16], strides = [1, 1]} : vector<8x96xf32> to vector<8x16xf32>
    %45 = vector.extract_strided_slice %42 {offsets = [0, 64], sizes = [8, 16], strides = [1, 1]} : vector<8x96xf32> to vector<8x16xf32>
    %cst_14 = arith.constant dense<0.000000e+00> : vector<8x8xf32>
    %46 = tpu.matmul %43, %44, %cst_14 {dimension_numbers = #tpu.dot_dimension_numbers<[1], [1], [0], [0], [0, 0, 1, 0], [], []>} : vector<8x16xf32>, vector<8x16xf32>, vector<8x8xf32> -> vector<8x8xf32>
    %cst_15 = arith.constant 2.500000e-01 : f32
    %47 = vector.broadcast %cst_15 : f32 to vector<8x8xf32>
    %48 = arith.mulf %46, %47 : vector<8x8xf32>
    %cst_16 = arith.constant -1.000000e+30 : f32
    %49 = vector.broadcast %cst_16 : f32 to vector<8x8xf32>
    %50 = arith.select %12, %48, %49 : vector<8x8xi1>, vector<8x8xf32>
    %cst_17 = arith.constant dense<0xFF800000> : vector<8xf32>
    %51 = vector.multi_reduction <maximumf>, %50, %cst_17 [1] : vector<8x8xf32> to vector<8xf32>
    %52 = vector.shape_cast %51 : vector<8xf32> to vector<8x1xf32>
    %53 = vector.broadcast %52 : vector<8x1xf32> to vector<8x8xf32>
    %54 = arith.subf %50, %53 : vector<8x8xf32>
    %55 = math.exp %54 : vector<8x8xf32>
    %cst_18 = arith.constant dense<0.000000e+00> : vector<8xf32>
    %56 = vector.multi_reduction <add>, %55, %cst_18 [1] : vector<8x8xf32> to vector<8xf32>
    %57 = vector.shape_cast %56 : vector<8xf32> to vector<8x1xf32>
    %58 = vector.broadcast %57 : vector<8x1xf32> to vector<8x8xf32>
    %59 = arith.divf %55, %58 : vector<8x8xf32>
    %cst_19 = arith.constant dense<0.000000e+00> : vector<8x16xf32>
    %60 = tpu.matmul %59, %45, %cst_19 {dimension_numbers = #tpu.dot_dimension_numbers<[1], [0], [0], [1], [0, 0, 1, 1], [], []>} : vector<8x8xf32>, vector<8x16xf32>, vector<8x16xf32> -> vector<8x16xf32>
    %61 = vector.extract_strided_slice %42 {offsets = [0, 16], sizes = [8, 16], strides = [1, 1]} : vector<8x96xf32> to vector<8x16xf32>
    %62 = vector.extract_strided_slice %42 {offsets = [0, 48], sizes = [8, 16], strides = [1, 1]} : vector<8x96xf32> to vector<8x16xf32>
    %63 = vector.extract_strided_slice %42 {offsets = [0, 80], sizes = [8, 16], strides = [1, 1]} : vector<8x96xf32> to vector<8x16xf32>
    %cst_20 = arith.constant dense<0.000000e+00> : vector<8x8xf32>
    %64 = tpu.matmul %61, %62, %cst_20 {dimension_numbers = #tpu.dot_dimension_numbers<[1], [1], [0], [0], [0, 0, 1, 0], [], []>} : vector<8x16xf32>, vector<8x16xf32>, vector<8x8xf32> -> vector<8x8xf32>
    %cst_21 = arith.constant 2.500000e-01 : f32
    %65 = vector.broadcast %cst_21 : f32 to vector<8x8xf32>
    %66 = arith.mulf %64, %65 : vector<8x8xf32>
    %cst_22 = arith.constant -1.000000e+30 : f32
    %67 = vector.broadcast %cst_22 : f32 to vector<8x8xf32>
    %68 = arith.select %12, %66, %67 : vector<8x8xi1>, vector<8x8xf32>
    %cst_23 = arith.constant dense<0xFF800000> : vector<8xf32>
    %69 = vector.multi_reduction <maximumf>, %68, %cst_23 [1] : vector<8x8xf32> to vector<8xf32>
    %70 = vector.shape_cast %69 : vector<8xf32> to vector<8x1xf32>
    %71 = vector.broadcast %70 : vector<8x1xf32> to vector<8x8xf32>
    %72 = arith.subf %68, %71 : vector<8x8xf32>
    %73 = math.exp %72 : vector<8x8xf32>
    %cst_24 = arith.constant dense<0.000000e+00> : vector<8xf32>
    %74 = vector.multi_reduction <add>, %73, %cst_24 [1] : vector<8x8xf32> to vector<8xf32>
    %75 = vector.shape_cast %74 : vector<8xf32> to vector<8x1xf32>
    %76 = vector.broadcast %75 : vector<8x1xf32> to vector<8x8xf32>
    %77 = arith.divf %73, %76 : vector<8x8xf32>
    %cst_25 = arith.constant dense<0.000000e+00> : vector<8x16xf32>
    %78 = tpu.matmul %77, %63, %cst_25 {dimension_numbers = #tpu.dot_dimension_numbers<[1], [0], [0], [1], [0, 0, 1, 1], [], []>} : vector<8x8xf32>, vector<8x16xf32>, vector<8x16xf32> -> vector<8x16xf32>
    %79 = tpu.concatenate %60, %78 in 1 : vector<8x16xf32>, vector<8x16xf32> -> vector<8x32xf32>
    %80 = vector.extract_strided_slice %41 {offsets = [8, 0], sizes = [8, 96], strides = [1, 1]} : vector<16x96xf32> to vector<8x96xf32>
    %81 = vector.extract_strided_slice %80 {offsets = [0, 0], sizes = [8, 16], strides = [1, 1]} : vector<8x96xf32> to vector<8x16xf32>
    %82 = vector.extract_strided_slice %80 {offsets = [0, 32], sizes = [8, 16], strides = [1, 1]} : vector<8x96xf32> to vector<8x16xf32>
    %83 = vector.extract_strided_slice %80 {offsets = [0, 64], sizes = [8, 16], strides = [1, 1]} : vector<8x96xf32> to vector<8x16xf32>
    %cst_26 = arith.constant dense<0.000000e+00> : vector<8x8xf32>
    %84 = tpu.matmul %81, %82, %cst_26 {dimension_numbers = #tpu.dot_dimension_numbers<[1], [1], [0], [0], [0, 0, 1, 0], [], []>} : vector<8x16xf32>, vector<8x16xf32>, vector<8x8xf32> -> vector<8x8xf32>
    %cst_27 = arith.constant 2.500000e-01 : f32
    %85 = vector.broadcast %cst_27 : f32 to vector<8x8xf32>
    %86 = arith.mulf %84, %85 : vector<8x8xf32>
    %cst_28 = arith.constant -1.000000e+30 : f32
    %87 = vector.broadcast %cst_28 : f32 to vector<8x8xf32>
    %88 = arith.select %12, %86, %87 : vector<8x8xi1>, vector<8x8xf32>
    %cst_29 = arith.constant dense<0xFF800000> : vector<8xf32>
    %89 = vector.multi_reduction <maximumf>, %88, %cst_29 [1] : vector<8x8xf32> to vector<8xf32>
    %90 = vector.shape_cast %89 : vector<8xf32> to vector<8x1xf32>
    %91 = vector.broadcast %90 : vector<8x1xf32> to vector<8x8xf32>
    %92 = arith.subf %88, %91 : vector<8x8xf32>
    %93 = math.exp %92 : vector<8x8xf32>
    %cst_30 = arith.constant dense<0.000000e+00> : vector<8xf32>
    %94 = vector.multi_reduction <add>, %93, %cst_30 [1] : vector<8x8xf32> to vector<8xf32>
    %95 = vector.shape_cast %94 : vector<8xf32> to vector<8x1xf32>
    %96 = vector.broadcast %95 : vector<8x1xf32> to vector<8x8xf32>
    %97 = arith.divf %93, %96 : vector<8x8xf32>
    %cst_31 = arith.constant dense<0.000000e+00> : vector<8x16xf32>
    %98 = tpu.matmul %97, %83, %cst_31 {dimension_numbers = #tpu.dot_dimension_numbers<[1], [0], [0], [1], [0, 0, 1, 1], [], []>} : vector<8x8xf32>, vector<8x16xf32>, vector<8x16xf32> -> vector<8x16xf32>
    %99 = vector.extract_strided_slice %80 {offsets = [0, 16], sizes = [8, 16], strides = [1, 1]} : vector<8x96xf32> to vector<8x16xf32>
    %100 = vector.extract_strided_slice %80 {offsets = [0, 48], sizes = [8, 16], strides = [1, 1]} : vector<8x96xf32> to vector<8x16xf32>
    %101 = vector.extract_strided_slice %80 {offsets = [0, 80], sizes = [8, 16], strides = [1, 1]} : vector<8x96xf32> to vector<8x16xf32>
    %cst_32 = arith.constant dense<0.000000e+00> : vector<8x8xf32>
    %102 = tpu.matmul %99, %100, %cst_32 {dimension_numbers = #tpu.dot_dimension_numbers<[1], [1], [0], [0], [0, 0, 1, 0], [], []>} : vector<8x16xf32>, vector<8x16xf32>, vector<8x8xf32> -> vector<8x8xf32>
    %cst_33 = arith.constant 2.500000e-01 : f32
    %103 = vector.broadcast %cst_33 : f32 to vector<8x8xf32>
    %104 = arith.mulf %102, %103 : vector<8x8xf32>
    %cst_34 = arith.constant -1.000000e+30 : f32
    %105 = vector.broadcast %cst_34 : f32 to vector<8x8xf32>
    %106 = arith.select %12, %104, %105 : vector<8x8xi1>, vector<8x8xf32>
    %cst_35 = arith.constant dense<0xFF800000> : vector<8xf32>
    %107 = vector.multi_reduction <maximumf>, %106, %cst_35 [1] : vector<8x8xf32> to vector<8xf32>
    %108 = vector.shape_cast %107 : vector<8xf32> to vector<8x1xf32>
    %109 = vector.broadcast %108 : vector<8x1xf32> to vector<8x8xf32>
    %110 = arith.subf %106, %109 : vector<8x8xf32>
    %111 = math.exp %110 : vector<8x8xf32>
    %cst_36 = arith.constant dense<0.000000e+00> : vector<8xf32>
    %112 = vector.multi_reduction <add>, %111, %cst_36 [1] : vector<8x8xf32> to vector<8xf32>
    %113 = vector.shape_cast %112 : vector<8xf32> to vector<8x1xf32>
    %114 = vector.broadcast %113 : vector<8x1xf32> to vector<8x8xf32>
    %115 = arith.divf %111, %114 : vector<8x8xf32>
    %cst_37 = arith.constant dense<0.000000e+00> : vector<8x16xf32>
    %116 = tpu.matmul %115, %101, %cst_37 {dimension_numbers = #tpu.dot_dimension_numbers<[1], [0], [0], [1], [0, 0, 1, 1], [], []>} : vector<8x8xf32>, vector<8x16xf32>, vector<8x16xf32> -> vector<8x16xf32>
    %117 = tpu.concatenate %98, %116 in 1 : vector<8x16xf32>, vector<8x16xf32> -> vector<8x32xf32>
    %118 = tpu.concatenate %79, %117 in 0 : vector<8x32xf32>, vector<8x32xf32> -> vector<16x32xf32>
    %c288 = arith.constant 288 : index
    %c0_38 = arith.constant 0 : index
    %119 = vector.load %arg2[%c288, %c0_38] : memref<608x128xf32, #tpu.memory_space<vmem>>, vector<32x32xf32>
    %cst_39 = arith.constant dense<0.000000e+00> : vector<16x32xf32>
    %120 = tpu.matmul %118, %119, %cst_39 {dimension_numbers = #tpu.dot_dimension_numbers<[1], [0], [0], [1], [0, 0, 1, 1], [], []>} : vector<16x32xf32>, vector<32x32xf32>, vector<16x32xf32> -> vector<16x32xf32>
    %121 = vector.extract_strided_slice %0 {offsets = [4, 0], sizes = [1, 32], strides = [1, 1]} : vector<20x128xf32> to vector<1x32xf32>
    %122 = vector.broadcast %121 : vector<1x32xf32> to vector<16x32xf32>
    %123 = arith.addf %120, %122 : vector<16x32xf32>
    %124 = arith.addf %9, %123 : vector<16x32xf32>
    %125 = vector.extract_strided_slice %0 {offsets = [5, 0], sizes = [1, 32], strides = [1, 1]} : vector<20x128xf32> to vector<1x32xf32>
    %126 = vector.extract_strided_slice %0 {offsets = [6, 0], sizes = [1, 32], strides = [1, 1]} : vector<20x128xf32> to vector<1x32xf32>
    %cst_40 = arith.constant dense<0.000000e+00> : vector<16xf32>
    %127 = vector.multi_reduction <add>, %124, %cst_40 [1] : vector<16x32xf32> to vector<16xf32>
    %128 = vector.shape_cast %127 : vector<16xf32> to vector<16x1xf32>
    %cst_41 = arith.constant 3.200000e+01 : f32
    %129 = vector.broadcast %cst_41 : f32 to vector<16x1xf32>
    %130 = arith.divf %128, %129 : vector<16x1xf32>
    %131 = vector.broadcast %130 : vector<16x1xf32> to vector<16x32xf32>
    %132 = arith.subf %124, %131 : vector<16x32xf32>
    %133 = arith.mulf %132, %132 : vector<16x32xf32>
    %cst_42 = arith.constant dense<0.000000e+00> : vector<16xf32>
    %134 = vector.multi_reduction <add>, %133, %cst_42 [1] : vector<16x32xf32> to vector<16xf32>
    %135 = vector.shape_cast %134 : vector<16xf32> to vector<16x1xf32>
    %cst_43 = arith.constant 3.200000e+01 : f32
    %136 = vector.broadcast %cst_43 : f32 to vector<16x1xf32>
    %137 = arith.divf %135, %136 : vector<16x1xf32>
    %138 = vector.broadcast %130 : vector<16x1xf32> to vector<16x32xf32>
    %139 = arith.subf %124, %138 : vector<16x32xf32>
    %cst_44 = arith.constant 9.99999996E-13 : f32
    %140 = vector.broadcast %cst_44 : f32 to vector<16x1xf32>
    %141 = arith.addf %137, %140 : vector<16x1xf32>
    %142 = math.rsqrt %141 : vector<16x1xf32>
    %143 = vector.broadcast %142 : vector<16x1xf32> to vector<16x32xf32>
    %144 = arith.mulf %139, %143 : vector<16x32xf32>
    %145 = vector.broadcast %125 : vector<1x32xf32> to vector<16x32xf32>
    %146 = arith.mulf %144, %145 : vector<16x32xf32>
    %147 = vector.broadcast %126 : vector<1x32xf32> to vector<16x32xf32>
    %148 = arith.addf %146, %147 : vector<16x32xf32>
    %c320 = arith.constant 320 : index
    %c0_45 = arith.constant 0 : index
    %149 = vector.load %arg2[%c320, %c0_45] : memref<608x128xf32, #tpu.memory_space<vmem>>, vector<32x64xf32>
    %cst_46 = arith.constant dense<0.000000e+00> : vector<16x64xf32>
    %150 = tpu.matmul %148, %149, %cst_46 {dimension_numbers = #tpu.dot_dimension_numbers<[1], [0], [0], [1], [0, 0, 1, 1], [], []>} : vector<16x32xf32>, vector<32x64xf32>, vector<16x64xf32> -> vector<16x64xf32>
    %151 = vector.extract_strided_slice %0 {offsets = [7, 0], sizes = [1, 64], strides = [1, 1]} : vector<20x128xf32> to vector<1x64xf32>
    %152 = vector.broadcast %151 : vector<1x64xf32> to vector<16x64xf32>
    %153 = arith.addf %150, %152 : vector<16x64xf32>
    %cst_47 = arith.constant 5.000000e-01 : f32
    %154 = vector.broadcast %cst_47 : f32 to vector<16x64xf32>
    %155 = arith.mulf %154, %153 : vector<16x64xf32>
    %cst_48 = arith.constant 4.471500e-02 : f32
    %156 = vector.broadcast %cst_48 : f32 to vector<16x64xf32>
    %157 = arith.mulf %156, %153 : vector<16x64xf32>
    %158 = arith.mulf %157, %153 : vector<16x64xf32>
    %159 = arith.mulf %158, %153 : vector<16x64xf32>
    %160 = arith.addf %153, %159 : vector<16x64xf32>
    %cst_49 = arith.constant 0.797884583 : f32
    %161 = vector.broadcast %cst_49 : f32 to vector<16x64xf32>
    %162 = arith.mulf %161, %160 : vector<16x64xf32>
    %163 = math.tanh %162 : vector<16x64xf32>
    %cst_50 = arith.constant 1.000000e+00 : f32
    %164 = vector.broadcast %cst_50 : f32 to vector<16x64xf32>
    %165 = arith.addf %164, %163 : vector<16x64xf32>
    %166 = arith.mulf %155, %165 : vector<16x64xf32>
    %c352 = arith.constant 352 : index
    %c0_51 = arith.constant 0 : index
    %167 = vector.load %arg2[%c352, %c0_51] : memref<608x128xf32, #tpu.memory_space<vmem>>, vector<64x32xf32>
    %cst_52 = arith.constant dense<0.000000e+00> : vector<16x32xf32>
    %168 = tpu.matmul %166, %167, %cst_52 {dimension_numbers = #tpu.dot_dimension_numbers<[1], [0], [0], [1], [0, 0, 1, 1], [], []>} : vector<16x64xf32>, vector<64x32xf32>, vector<16x32xf32> -> vector<16x32xf32>
    %169 = arith.addf %124, %168 : vector<16x32xf32>
    %170 = vector.extract_strided_slice %0 {offsets = [8, 0], sizes = [1, 32], strides = [1, 1]} : vector<20x128xf32> to vector<1x32xf32>
    %171 = vector.broadcast %170 : vector<1x32xf32> to vector<16x32xf32>
    %172 = arith.addf %169, %171 : vector<16x32xf32>
    %173 = vector.extract_strided_slice %0 {offsets = [9, 0], sizes = [1, 32], strides = [1, 1]} : vector<20x128xf32> to vector<1x32xf32>
    %174 = vector.extract_strided_slice %0 {offsets = [10, 0], sizes = [1, 32], strides = [1, 1]} : vector<20x128xf32> to vector<1x32xf32>
    %cst_53 = arith.constant dense<0.000000e+00> : vector<16xf32>
    %175 = vector.multi_reduction <add>, %172, %cst_53 [1] : vector<16x32xf32> to vector<16xf32>
    %176 = vector.shape_cast %175 : vector<16xf32> to vector<16x1xf32>
    %cst_54 = arith.constant 3.200000e+01 : f32
    %177 = vector.broadcast %cst_54 : f32 to vector<16x1xf32>
    %178 = arith.divf %176, %177 : vector<16x1xf32>
    %179 = vector.broadcast %178 : vector<16x1xf32> to vector<16x32xf32>
    %180 = arith.subf %172, %179 : vector<16x32xf32>
    %181 = arith.mulf %180, %180 : vector<16x32xf32>
    %cst_55 = arith.constant dense<0.000000e+00> : vector<16xf32>
    %182 = vector.multi_reduction <add>, %181, %cst_55 [1] : vector<16x32xf32> to vector<16xf32>
    %183 = vector.shape_cast %182 : vector<16xf32> to vector<16x1xf32>
    %cst_56 = arith.constant 3.200000e+01 : f32
    %184 = vector.broadcast %cst_56 : f32 to vector<16x1xf32>
    %185 = arith.divf %183, %184 : vector<16x1xf32>
    %186 = vector.broadcast %178 : vector<16x1xf32> to vector<16x32xf32>
    %187 = arith.subf %172, %186 : vector<16x32xf32>
    %cst_57 = arith.constant 9.99999996E-13 : f32
    %188 = vector.broadcast %cst_57 : f32 to vector<16x1xf32>
    %189 = arith.addf %185, %188 : vector<16x1xf32>
    %190 = math.rsqrt %189 : vector<16x1xf32>
    %191 = vector.broadcast %190 : vector<16x1xf32> to vector<16x32xf32>
    %192 = arith.mulf %187, %191 : vector<16x32xf32>
    %193 = vector.broadcast %173 : vector<1x32xf32> to vector<16x32xf32>
    %194 = arith.mulf %192, %193 : vector<16x32xf32>
    %195 = vector.broadcast %174 : vector<1x32xf32> to vector<16x32xf32>
    %196 = arith.addf %194, %195 : vector<16x32xf32>
    %c416 = arith.constant 416 : index
    %c0_58 = arith.constant 0 : index
    %197 = vector.load %arg2[%c416, %c0_58] : memref<608x128xf32, #tpu.memory_space<vmem>>, vector<32x96xf32>
    %cst_59 = arith.constant dense<0.000000e+00> : vector<16x96xf32>
    %198 = tpu.matmul %196, %197, %cst_59 {dimension_numbers = #tpu.dot_dimension_numbers<[1], [0], [0], [1], [0, 0, 1, 1], [], []>} : vector<16x32xf32>, vector<32x96xf32>, vector<16x96xf32> -> vector<16x96xf32>
    %199 = vector.extract_strided_slice %0 {offsets = [11, 0], sizes = [1, 96], strides = [1, 1]} : vector<20x128xf32> to vector<1x96xf32>
    %200 = vector.broadcast %199 : vector<1x96xf32> to vector<16x96xf32>
    %201 = arith.addf %198, %200 : vector<16x96xf32>
    %202 = vector.extract_strided_slice %201 {offsets = [0, 0], sizes = [8, 96], strides = [1, 1]} : vector<16x96xf32> to vector<8x96xf32>
    %203 = vector.extract_strided_slice %202 {offsets = [0, 0], sizes = [8, 16], strides = [1, 1]} : vector<8x96xf32> to vector<8x16xf32>
    %204 = vector.extract_strided_slice %202 {offsets = [0, 32], sizes = [8, 16], strides = [1, 1]} : vector<8x96xf32> to vector<8x16xf32>
    %205 = vector.extract_strided_slice %202 {offsets = [0, 64], sizes = [8, 16], strides = [1, 1]} : vector<8x96xf32> to vector<8x16xf32>
    %cst_60 = arith.constant dense<0.000000e+00> : vector<8x8xf32>
    %206 = tpu.matmul %203, %204, %cst_60 {dimension_numbers = #tpu.dot_dimension_numbers<[1], [1], [0], [0], [0, 0, 1, 0], [], []>} : vector<8x16xf32>, vector<8x16xf32>, vector<8x8xf32> -> vector<8x8xf32>
    %cst_61 = arith.constant 2.500000e-01 : f32
    %207 = vector.broadcast %cst_61 : f32 to vector<8x8xf32>
    %208 = arith.mulf %206, %207 : vector<8x8xf32>
    %cst_62 = arith.constant -1.000000e+30 : f32
    %209 = vector.broadcast %cst_62 : f32 to vector<8x8xf32>
    %210 = arith.select %12, %208, %209 : vector<8x8xi1>, vector<8x8xf32>
    %cst_63 = arith.constant dense<0xFF800000> : vector<8xf32>
    %211 = vector.multi_reduction <maximumf>, %210, %cst_63 [1] : vector<8x8xf32> to vector<8xf32>
    %212 = vector.shape_cast %211 : vector<8xf32> to vector<8x1xf32>
    %213 = vector.broadcast %212 : vector<8x1xf32> to vector<8x8xf32>
    %214 = arith.subf %210, %213 : vector<8x8xf32>
    %215 = math.exp %214 : vector<8x8xf32>
    %cst_64 = arith.constant dense<0.000000e+00> : vector<8xf32>
    %216 = vector.multi_reduction <add>, %215, %cst_64 [1] : vector<8x8xf32> to vector<8xf32>
    %217 = vector.shape_cast %216 : vector<8xf32> to vector<8x1xf32>
    %218 = vector.broadcast %217 : vector<8x1xf32> to vector<8x8xf32>
    %219 = arith.divf %215, %218 : vector<8x8xf32>
    %cst_65 = arith.constant dense<0.000000e+00> : vector<8x16xf32>
    %220 = tpu.matmul %219, %205, %cst_65 {dimension_numbers = #tpu.dot_dimension_numbers<[1], [0], [0], [1], [0, 0, 1, 1], [], []>} : vector<8x8xf32>, vector<8x16xf32>, vector<8x16xf32> -> vector<8x16xf32>
    %221 = vector.extract_strided_slice %202 {offsets = [0, 16], sizes = [8, 16], strides = [1, 1]} : vector<8x96xf32> to vector<8x16xf32>
    %222 = vector.extract_strided_slice %202 {offsets = [0, 48], sizes = [8, 16], strides = [1, 1]} : vector<8x96xf32> to vector<8x16xf32>
    %223 = vector.extract_strided_slice %202 {offsets = [0, 80], sizes = [8, 16], strides = [1, 1]} : vector<8x96xf32> to vector<8x16xf32>
    %cst_66 = arith.constant dense<0.000000e+00> : vector<8x8xf32>
    %224 = tpu.matmul %221, %222, %cst_66 {dimension_numbers = #tpu.dot_dimension_numbers<[1], [1], [0], [0], [0, 0, 1, 0], [], []>} : vector<8x16xf32>, vector<8x16xf32>, vector<8x8xf32> -> vector<8x8xf32>
    %cst_67 = arith.constant 2.500000e-01 : f32
    %225 = vector.broadcast %cst_67 : f32 to vector<8x8xf32>
    %226 = arith.mulf %224, %225 : vector<8x8xf32>
    %cst_68 = arith.constant -1.000000e+30 : f32
    %227 = vector.broadcast %cst_68 : f32 to vector<8x8xf32>
    %228 = arith.select %12, %226, %227 : vector<8x8xi1>, vector<8x8xf32>
    %cst_69 = arith.constant dense<0xFF800000> : vector<8xf32>
    %229 = vector.multi_reduction <maximumf>, %228, %cst_69 [1] : vector<8x8xf32> to vector<8xf32>
    %230 = vector.shape_cast %229 : vector<8xf32> to vector<8x1xf32>
    %231 = vector.broadcast %230 : vector<8x1xf32> to vector<8x8xf32>
    %232 = arith.subf %228, %231 : vector<8x8xf32>
    %233 = math.exp %232 : vector<8x8xf32>
    %cst_70 = arith.constant dense<0.000000e+00> : vector<8xf32>
    %234 = vector.multi_reduction <add>, %233, %cst_70 [1] : vector<8x8xf32> to vector<8xf32>
    %235 = vector.shape_cast %234 : vector<8xf32> to vector<8x1xf32>
    %236 = vector.broadcast %235 : vector<8x1xf32> to vector<8x8xf32>
    %237 = arith.divf %233, %236 : vector<8x8xf32>
    %cst_71 = arith.constant dense<0.000000e+00> : vector<8x16xf32>
    %238 = tpu.matmul %237, %223, %cst_71 {dimension_numbers = #tpu.dot_dimension_numbers<[1], [0], [0], [1], [0, 0, 1, 1], [], []>} : vector<8x8xf32>, vector<8x16xf32>, vector<8x16xf32> -> vector<8x16xf32>
    %239 = tpu.concatenate %220, %238 in 1 : vector<8x16xf32>, vector<8x16xf32> -> vector<8x32xf32>
    %240 = vector.extract_strided_slice %201 {offsets = [8, 0], sizes = [8, 96], strides = [1, 1]} : vector<16x96xf32> to vector<8x96xf32>
    %241 = vector.extract_strided_slice %240 {offsets = [0, 0], sizes = [8, 16], strides = [1, 1]} : vector<8x96xf32> to vector<8x16xf32>
    %242 = vector.extract_strided_slice %240 {offsets = [0, 32], sizes = [8, 16], strides = [1, 1]} : vector<8x96xf32> to vector<8x16xf32>
    %243 = vector.extract_strided_slice %240 {offsets = [0, 64], sizes = [8, 16], strides = [1, 1]} : vector<8x96xf32> to vector<8x16xf32>
    %cst_72 = arith.constant dense<0.000000e+00> : vector<8x8xf32>
    %244 = tpu.matmul %241, %242, %cst_72 {dimension_numbers = #tpu.dot_dimension_numbers<[1], [1], [0], [0], [0, 0, 1, 0], [], []>} : vector<8x16xf32>, vector<8x16xf32>, vector<8x8xf32> -> vector<8x8xf32>
    %cst_73 = arith.constant 2.500000e-01 : f32
    %245 = vector.broadcast %cst_73 : f32 to vector<8x8xf32>
    %246 = arith.mulf %244, %245 : vector<8x8xf32>
    %cst_74 = arith.constant -1.000000e+30 : f32
    %247 = vector.broadcast %cst_74 : f32 to vector<8x8xf32>
    %248 = arith.select %12, %246, %247 : vector<8x8xi1>, vector<8x8xf32>
    %cst_75 = arith.constant dense<0xFF800000> : vector<8xf32>
    %249 = vector.multi_reduction <maximumf>, %248, %cst_75 [1] : vector<8x8xf32> to vector<8xf32>
    %250 = vector.shape_cast %249 : vector<8xf32> to vector<8x1xf32>
    %251 = vector.broadcast %250 : vector<8x1xf32> to vector<8x8xf32>
    %252 = arith.subf %248, %251 : vector<8x8xf32>
    %253 = math.exp %252 : vector<8x8xf32>
    %cst_76 = arith.constant dense<0.000000e+00> : vector<8xf32>
    %254 = vector.multi_reduction <add>, %253, %cst_76 [1] : vector<8x8xf32> to vector<8xf32>
    %255 = vector.shape_cast %254 : vector<8xf32> to vector<8x1xf32>
    %256 = vector.broadcast %255 : vector<8x1xf32> to vector<8x8xf32>
    %257 = arith.divf %253, %256 : vector<8x8xf32>
    %cst_77 = arith.constant dense<0.000000e+00> : vector<8x16xf32>
    %258 = tpu.matmul %257, %243, %cst_77 {dimension_numbers = #tpu.dot_dimension_numbers<[1], [0], [0], [1], [0, 0, 1, 1], [], []>} : vector<8x8xf32>, vector<8x16xf32>, vector<8x16xf32> -> vector<8x16xf32>
    %259 = vector.extract_strided_slice %240 {offsets = [0, 16], sizes = [8, 16], strides = [1, 1]} : vector<8x96xf32> to vector<8x16xf32>
    %260 = vector.extract_strided_slice %240 {offsets = [0, 48], sizes = [8, 16], strides = [1, 1]} : vector<8x96xf32> to vector<8x16xf32>
    %261 = vector.extract_strided_slice %240 {offsets = [0, 80], sizes = [8, 16], strides = [1, 1]} : vector<8x96xf32> to vector<8x16xf32>
    %cst_78 = arith.constant dense<0.000000e+00> : vector<8x8xf32>
    %262 = tpu.matmul %259, %260, %cst_78 {dimension_numbers = #tpu.dot_dimension_numbers<[1], [1], [0], [0], [0, 0, 1, 0], [], []>} : vector<8x16xf32>, vector<8x16xf32>, vector<8x8xf32> -> vector<8x8xf32>
    %cst_79 = arith.constant 2.500000e-01 : f32
    %263 = vector.broadcast %cst_79 : f32 to vector<8x8xf32>
    %264 = arith.mulf %262, %263 : vector<8x8xf32>
    %cst_80 = arith.constant -1.000000e+30 : f32
    %265 = vector.broadcast %cst_80 : f32 to vector<8x8xf32>
    %266 = arith.select %12, %264, %265 : vector<8x8xi1>, vector<8x8xf32>
    %cst_81 = arith.constant dense<0xFF800000> : vector<8xf32>
    %267 = vector.multi_reduction <maximumf>, %266, %cst_81 [1] : vector<8x8xf32> to vector<8xf32>
    %268 = vector.shape_cast %267 : vector<8xf32> to vector<8x1xf32>
    %269 = vector.broadcast %268 : vector<8x1xf32> to vector<8x8xf32>
    %270 = arith.subf %266, %269 : vector<8x8xf32>
    %271 = math.exp %270 : vector<8x8xf32>
    %cst_82 = arith.constant dense<0.000000e+00> : vector<8xf32>
    %272 = vector.multi_reduction <add>, %271, %cst_82 [1] : vector<8x8xf32> to vector<8xf32>
    %273 = vector.shape_cast %272 : vector<8xf32> to vector<8x1xf32>
    %274 = vector.broadcast %273 : vector<8x1xf32> to vector<8x8xf32>
    %275 = arith.divf %271, %274 : vector<8x8xf32>
    %cst_83 = arith.constant dense<0.000000e+00> : vector<8x16xf32>
    %276 = tpu.matmul %275, %261, %cst_83 {dimension_numbers = #tpu.dot_dimension_numbers<[1], [0], [0], [1], [0, 0, 1, 1], [], []>} : vector<8x8xf32>, vector<8x16xf32>, vector<8x16xf32> -> vector<8x16xf32>
    %277 = tpu.concatenate %258, %276 in 1 : vector<8x16xf32>, vector<8x16xf32> -> vector<8x32xf32>
    %278 = tpu.concatenate %239, %277 in 0 : vector<8x32xf32>, vector<8x32xf32> -> vector<16x32xf32>
    %c448 = arith.constant 448 : index
    %c0_84 = arith.constant 0 : index
    %279 = vector.load %arg2[%c448, %c0_84] : memref<608x128xf32, #tpu.memory_space<vmem>>, vector<32x32xf32>
    %cst_85 = arith.constant dense<0.000000e+00> : vector<16x32xf32>
    %280 = tpu.matmul %278, %279, %cst_85 {dimension_numbers = #tpu.dot_dimension_numbers<[1], [0], [0], [1], [0, 0, 1, 1], [], []>} : vector<16x32xf32>, vector<32x32xf32>, vector<16x32xf32> -> vector<16x32xf32>
    %281 = vector.extract_strided_slice %0 {offsets = [12, 0], sizes = [1, 32], strides = [1, 1]} : vector<20x128xf32> to vector<1x32xf32>
    %282 = vector.broadcast %281 : vector<1x32xf32> to vector<16x32xf32>
    %283 = arith.addf %280, %282 : vector<16x32xf32>
    %284 = arith.addf %172, %283 : vector<16x32xf32>
    %285 = vector.extract_strided_slice %0 {offsets = [13, 0], sizes = [1, 32], strides = [1, 1]} : vector<20x128xf32> to vector<1x32xf32>
    %286 = vector.extract_strided_slice %0 {offsets = [14, 0], sizes = [1, 32], strides = [1, 1]} : vector<20x128xf32> to vector<1x32xf32>
    %cst_86 = arith.constant dense<0.000000e+00> : vector<16xf32>
    %287 = vector.multi_reduction <add>, %284, %cst_86 [1] : vector<16x32xf32> to vector<16xf32>
    %288 = vector.shape_cast %287 : vector<16xf32> to vector<16x1xf32>
    %cst_87 = arith.constant 3.200000e+01 : f32
    %289 = vector.broadcast %cst_87 : f32 to vector<16x1xf32>
    %290 = arith.divf %288, %289 : vector<16x1xf32>
    %291 = vector.broadcast %290 : vector<16x1xf32> to vector<16x32xf32>
    %292 = arith.subf %284, %291 : vector<16x32xf32>
    %293 = arith.mulf %292, %292 : vector<16x32xf32>
    %cst_88 = arith.constant dense<0.000000e+00> : vector<16xf32>
    %294 = vector.multi_reduction <add>, %293, %cst_88 [1] : vector<16x32xf32> to vector<16xf32>
    %295 = vector.shape_cast %294 : vector<16xf32> to vector<16x1xf32>
    %cst_89 = arith.constant 3.200000e+01 : f32
    %296 = vector.broadcast %cst_89 : f32 to vector<16x1xf32>
    %297 = arith.divf %295, %296 : vector<16x1xf32>
    %298 = vector.broadcast %290 : vector<16x1xf32> to vector<16x32xf32>
    %299 = arith.subf %284, %298 : vector<16x32xf32>
    %cst_90 = arith.constant 9.99999996E-13 : f32
    %300 = vector.broadcast %cst_90 : f32 to vector<16x1xf32>
    %301 = arith.addf %297, %300 : vector<16x1xf32>
    %302 = math.rsqrt %301 : vector<16x1xf32>
    %303 = vector.broadcast %302 : vector<16x1xf32> to vector<16x32xf32>
    %304 = arith.mulf %299, %303 : vector<16x32xf32>
    %305 = vector.broadcast %285 : vector<1x32xf32> to vector<16x32xf32>
    %306 = arith.mulf %304, %305 : vector<16x32xf32>
    %307 = vector.broadcast %286 : vector<1x32xf32> to vector<16x32xf32>
    %308 = arith.addf %306, %307 : vector<16x32xf32>
    %c480 = arith.constant 480 : index
    %c0_91 = arith.constant 0 : index
    %309 = vector.load %arg2[%c480, %c0_91] : memref<608x128xf32, #tpu.memory_space<vmem>>, vector<32x64xf32>
    %cst_92 = arith.constant dense<0.000000e+00> : vector<16x64xf32>
    %310 = tpu.matmul %308, %309, %cst_92 {dimension_numbers = #tpu.dot_dimension_numbers<[1], [0], [0], [1], [0, 0, 1, 1], [], []>} : vector<16x32xf32>, vector<32x64xf32>, vector<16x64xf32> -> vector<16x64xf32>
    %311 = vector.extract_strided_slice %0 {offsets = [15, 0], sizes = [1, 64], strides = [1, 1]} : vector<20x128xf32> to vector<1x64xf32>
    %312 = vector.broadcast %311 : vector<1x64xf32> to vector<16x64xf32>
    %313 = arith.addf %310, %312 : vector<16x64xf32>
    %cst_93 = arith.constant 5.000000e-01 : f32
    %314 = vector.broadcast %cst_93 : f32 to vector<16x64xf32>
    %315 = arith.mulf %314, %313 : vector<16x64xf32>
    %cst_94 = arith.constant 4.471500e-02 : f32
    %316 = vector.broadcast %cst_94 : f32 to vector<16x64xf32>
    %317 = arith.mulf %316, %313 : vector<16x64xf32>
    %318 = arith.mulf %317, %313 : vector<16x64xf32>
    %319 = arith.mulf %318, %313 : vector<16x64xf32>
    %320 = arith.addf %313, %319 : vector<16x64xf32>
    %cst_95 = arith.constant 0.797884583 : f32
    %321 = vector.broadcast %cst_95 : f32 to vector<16x64xf32>
    %322 = arith.mulf %321, %320 : vector<16x64xf32>
    %323 = math.tanh %322 : vector<16x64xf32>
    %cst_96 = arith.constant 1.000000e+00 : f32
    %324 = vector.broadcast %cst_96 : f32 to vector<16x64xf32>
    %325 = arith.addf %324, %323 : vector<16x64xf32>
    %326 = arith.mulf %315, %325 : vector<16x64xf32>
    %c512 = arith.constant 512 : index
    %c0_97 = arith.constant 0 : index
    %327 = vector.load %arg2[%c512, %c0_97] : memref<608x128xf32, #tpu.memory_space<vmem>>, vector<64x32xf32>
    %cst_98 = arith.constant dense<0.000000e+00> : vector<16x32xf32>
    %328 = tpu.matmul %326, %327, %cst_98 {dimension_numbers = #tpu.dot_dimension_numbers<[1], [0], [0], [1], [0, 0, 1, 1], [], []>} : vector<16x64xf32>, vector<64x32xf32>, vector<16x32xf32> -> vector<16x32xf32>
    %329 = arith.addf %284, %328 : vector<16x32xf32>
    %330 = vector.extract_strided_slice %0 {offsets = [16, 0], sizes = [1, 32], strides = [1, 1]} : vector<20x128xf32> to vector<1x32xf32>
    %331 = vector.broadcast %330 : vector<1x32xf32> to vector<16x32xf32>
    %332 = arith.addf %329, %331 : vector<16x32xf32>
    %333 = vector.extract_strided_slice %332 {offsets = [0, 0], sizes = [1, 32], strides = [1, 1]} : vector<16x32xf32> to vector<1x32xf32>
    %334 = vector.extract_strided_slice %332 {offsets = [8, 0], sizes = [1, 32], strides = [1, 1]} : vector<16x32xf32> to vector<1x32xf32>
    %335 = tpu.concatenate %333, %334 in 0 : vector<1x32xf32>, vector<1x32xf32> -> vector<2x32xf32>
    %336 = vector.extract_strided_slice %0 {offsets = [17, 0], sizes = [1, 32], strides = [1, 1]} : vector<20x128xf32> to vector<1x32xf32>
    %337 = vector.extract_strided_slice %0 {offsets = [18, 0], sizes = [1, 32], strides = [1, 1]} : vector<20x128xf32> to vector<1x32xf32>
    %cst_99 = arith.constant dense<0.000000e+00> : vector<2xf32>
    %338 = vector.multi_reduction <add>, %335, %cst_99 [1] : vector<2x32xf32> to vector<2xf32>
    %339 = vector.shape_cast %338 : vector<2xf32> to vector<2x1xf32>
    %cst_100 = arith.constant 3.200000e+01 : f32
    %340 = vector.broadcast %cst_100 : f32 to vector<2x1xf32>
    %341 = arith.divf %339, %340 : vector<2x1xf32>
    %342 = vector.broadcast %341 : vector<2x1xf32> to vector<2x32xf32>
    %343 = arith.subf %335, %342 : vector<2x32xf32>
    %344 = arith.mulf %343, %343 : vector<2x32xf32>
    %cst_101 = arith.constant dense<0.000000e+00> : vector<2xf32>
    %345 = vector.multi_reduction <add>, %344, %cst_101 [1] : vector<2x32xf32> to vector<2xf32>
    %346 = vector.shape_cast %345 : vector<2xf32> to vector<2x1xf32>
    %cst_102 = arith.constant 3.200000e+01 : f32
    %347 = vector.broadcast %cst_102 : f32 to vector<2x1xf32>
    %348 = arith.divf %346, %347 : vector<2x1xf32>
    %349 = vector.broadcast %341 : vector<2x1xf32> to vector<2x32xf32>
    %350 = arith.subf %335, %349 : vector<2x32xf32>
    %cst_103 = arith.constant 9.99999996E-13 : f32
    %351 = vector.broadcast %cst_103 : f32 to vector<2x1xf32>
    %352 = arith.addf %348, %351 : vector<2x1xf32>
    %353 = math.rsqrt %352 : vector<2x1xf32>
    %354 = vector.broadcast %353 : vector<2x1xf32> to vector<2x32xf32>
    %355 = arith.mulf %350, %354 : vector<2x32xf32>
    %356 = vector.broadcast %336 : vector<1x32xf32> to vector<2x32xf32>
    %357 = arith.mulf %355, %356 : vector<2x32xf32>
    %358 = vector.broadcast %337 : vector<1x32xf32> to vector<2x32xf32>
    %359 = arith.addf %357, %358 : vector<2x32xf32>
    %c576 = arith.constant 576 : index
    %c0_104 = arith.constant 0 : index
    %360 = vector.load %arg2[%c576, %c0_104] : memref<608x128xf32, #tpu.memory_space<vmem>>, vector<32x8xf32>
    %cst_105 = arith.constant dense<0.000000e+00> : vector<2x8xf32>
    %361 = tpu.matmul %359, %360, %cst_105 {dimension_numbers = #tpu.dot_dimension_numbers<[1], [0], [0], [1], [0, 0, 1, 1], [], []>} : vector<2x32xf32>, vector<32x8xf32>, vector<2x8xf32> -> vector<2x8xf32>
    %362 = vector.extract_strided_slice %0 {offsets = [19, 0], sizes = [1, 8], strides = [1, 1]} : vector<20x128xf32> to vector<1x8xf32>
    %363 = vector.broadcast %362 : vector<1x8xf32> to vector<2x8xf32>
    %364 = arith.addf %361, %363 : vector<2x8xf32>
    %c0_106 = arith.constant 0 : index
    %c0_107 = arith.constant 0 : index
    %365 = vector.load %arg4[%c0_106, %c0_107] : memref<2x8xf32, #tpu.memory_space<vmem>>, vector<2x8xf32>
    tpu.vector_store %arg4[%c0_106, %c0_107], %364 {strides = array<i32>} : memref<2x8xf32, #tpu.memory_space<vmem>>, vector<2x8xf32>,
    return
  }
}

</mosaic_0001>

<bundles_post_ra>
// kernel: vit_return_wrapper_forward.1
= control target key start
LH: loop header
LB: loop body
LE: loop exit
PB: predicated region body
PF: predicated region fallthrough
CT: control target
= control target key end

     0   :  { %s3726_s0 = inlined_call_operand.vmem [shape: f32[16,256], index: 0, kind: input, shape index: {}]   ;;  %s3727_s1 = inlined_call_operand.vmem [shape: f32[8,32], index: 1, kind: input, shape index: {}]   ;;  %s3728_s2 = inlined_call_operand.vmem [shape: f32[608,128], index: 2, kind: input, shape index: {}]   ;;  %s3729_s3 = inlined_call_operand.vmem [shape: f32[20,128], index: 3, kind: input, shape index: {}]   ;;  %s3730_s4 = inlined_call_operand.hbm [shape: f32[2,8], index: 4, kind: output, shape index: {}]  }
   0x1   :  { %v42_v0 = vld [vmem:[%s3728_s2 + $0x80] sm:$0xff]  ;;  %v43_v1 = vld [vmem:[%s3728_s2 + $0x88] sm:$0xff]  ;;  %v44_v5 = vld [vmem:[%s3728_s2 + $0x90] sm:$0xff] }
   0x2   :  { %v26_v2 = vld [vmem:[%s3728_s2] sm:$0xff]  ;;  %v2912_v3 = vpack.c.bf16 %v43_v1, %v42_v0  ;;  %v27_v4 = vld [vmem:[%s3728_s2 + $0x8] sm:$0xff]  ;;  %v45_v6 = vld [vmem:[%s3728_s2 + $0x98] sm:$0xff] }
   0x3   :  { %v2914_v7 = vpack.c.bf16 %v27_v4, %v26_v2  ;;  %v2916_v8 = vpack.c.bf16 %v45_v6, %v44_v5  ;;  %v28_v9 = vld [vmem:[%s3728_s2 + $0x10] sm:$0xff]  ;;  %v29_v10 = vld [vmem:[%s3728_s2 + $0x18] sm:$0xff]  ;;  %v46_v11 = vld [vmem:[%s3728_s2 + $0xa0] sm:$0xff] }
   0x4   :  { %2913 = vmatprep.subr.bf16.mxu0 %v2912_v3  ;;  %v47_v12 = vld [vmem:[%s3728_s2 + $0xa8] sm:$0xff]  ;;  %v2918_v13 = vpack.c.bf16 %v29_v10, %v28_v9  ;;  %v30_v15 = vld [vmem:[%s3728_s2 + $0x20] sm:$0xff]  ;;  %v48_v17 = vld [vmem:[%s3728_s2 + $0xb0] sm:$0xff] }
   0x5   :  { %2915 = vmatpush3.bf16.msra.mxu0 %v2914_v7  ;;  %v2920_v14 = vpack.c.bf16 %v47_v12, %v46_v11  ;;  %v31_v16 = vld [vmem:[%s3728_s2 + $0x28] sm:$0xff]  ;;  %v49_v18 = vld [vmem:[%s3728_s2 + $0xb8] sm:$0xff]  ;;  %v32_v21 = vld [vmem:[%s3728_s2 + $0x30] sm:$0xff] }
   0x6   :  { %2917 = vmatprep.subr.bf16.mxu0 %v2916_v8  ;;  %v2922_v19 = vpack.c.bf16 %v31_v16, %v30_v15  ;;  %v2924_v20 = vpack.c.bf16 %v49_v18, %v48_v17  ;;  %v33_v22 = vld [vmem:[%s3728_s2 + $0x38] sm:$0xff]  ;;  %v50_v23 = vld [vmem:[%s3728_s2 + $0xc0] sm:$0xff]  ;;  %v51_v24 = vld [vmem:[%s3728_s2 + $0xc8] sm:$0xff] }
   0x7   :  { %v23_v25 = vld [vmem:[%s3726_s0 + $0x8] sm:$0xff]  ;;  %v2926_v26 = vpack.c.bf16 %v33_v22, %v32_v21 }
   0x8   :  { %126 = vmatprep.mubr.f32.mxu0 %v23_v25 }
   0x9   :  { %2919 = vmatpush3.bf16.msra.mxu0 %v2918_v13 }
   0xa   :  { %2921 = vmatprep.subr.bf16.mxu0 %v2920_v14 }
   0xd   :  { %2923 = vmatpush3.bf16.msra.mxu0 %v2922_v19 }
   0xe   :  { %9 = vsyncpa [#allocation3], 0  ;;  %2925 = vmatprep.subr.bf16.mxu0 %v2924_v20  ;;  %v2928_v27 = vpack.c.bf16 %v51_v24, %v50_v23  ;;  %v34_v28 = vld [vmem:[%s3728_s2 + $0x40] sm:$0xff]  ;;  %v35_v29 = vld [vmem:[%s3728_s2 + $0x48] sm:$0xff]  ;;  %v58_v52 = vlaneseq  ;;  %vm142_vm0 = vcmask 261120   ;;  %vm3123_vm1 = vmmov 0  }
   0xf   :  { %v52_v30 = vld [vmem:[%s3728_s2 + $0xd0] sm:$0xff]  ;;  %v53_v31 = vld [vmem:[%s3728_s2 + $0xd8] sm:$0xff]  ;;  %v2930_v32 = vpack.c.bf16 %v35_v29, %v34_v28  ;;  %v54_v36 = vld [vmem:[%s3728_s2 + $0xe0] sm:$0xff]  ;;  %s3124_s19 = smov 96   ;;  %s3125_s20 = smov 80   ;;  %vm274_vm2 = vcmask 130048  }
  0x10   :  { %v2932_v33 = vpack.c.bf16 %v53_v31, %v52_v30  ;;  %v36_v34 = vld [vmem:[%s3728_s2 + $0x50] sm:$0xff]  ;;  %v37_v35 = vld [vmem:[%s3728_s2 + $0x58] sm:$0xff]  ;;  %v55_v37 = vld [vmem:[%s3728_s2 + $0xe8] sm:$0xff]  ;;  %v3266_v53 = vshrl.u32 %v58_v52, 7  ;;  %vm351_vm4 = vcmask 64512   ;;  %s3126_s21 = smov 64  }
  0x11   :  { %2927 = vmatpush3.bf16.msra.mxu0 %v2926_v26  ;;  %v2934_v38 = vpack.c.bf16 %v37_v35, %v36_v34  ;;  %v2936_v39 = vpack.c.bf16 %v55_v37, %v54_v36  ;;  %v38_v40 = vld [vmem:[%s3728_s2 + $0x60] sm:$0xff]  ;;  %v39_v41 = vld [vmem:[%s3728_s2 + $0x68] sm:$0xff]  ;;  %v56_v42 = vld [vmem:[%s3728_s2 + $0xf0] sm:$0xff]  ;;  %s3127_s22 = smov 112   ;;  %s3128_s23 = smov 48   ;;  %vm1193_vm5 = vcmask 523264  }
  0x12   :  { %2929 = vmatprep.subr.bf16.mxu0 %v2928_v27  ;;  %v57_v43 = vld [vmem:[%s3728_s2 + $0xf8] sm:$0xff]  ;;  %v2938_v44 = vpack.c.bf16 %v39_v41, %v38_v40  ;;  %v40_v46 = vld [vmem:[%s3728_s2 + $0x70] sm:$0xff]  ;;  %v22_v49 = vld [vmem:[%s3726_s0] sm:$0xff]  ;;  %v3269_v54 = vsub.s32 0, %v3266_v53  ;;  %v3306_v28 = vsub.s32 1, %v3266_v53  ;;  %v3309_v29 = vsub.s32 2, %v3266_v53 }
  0x13   :  { %v2940_v45 = vpack.c.bf16 %v57_v43, %v56_v42  ;;  %v41_v47 = vld [vmem:[%s3728_s2 + $0x78] sm:$0xff]  ;;  %v24_v51 = vld [vmem:[%s3726_s0 + $0x10] sm:$0xff]  ;;  %v3274_v55 = vld [vmem:[%s3729_s3] sm:$0xff]  ;;  %v3122_v40 = vmov 0.0   ;;  %v3324_v41 = vsub.s32 3, %v3266_v53  ;;  %s3129_s24 = smov 16  }
  0x14   :  { %v2942_v48 = vpack.c.bf16 %v41_v47, %v40_v46  ;;  %v25_v50 = vld [vmem:[%s3726_s0 + $0x18] sm:$0xff]  ;;  %v61_v57 = vrot.slane %v3274_v55, %v3269_v54  ;;  %v21_v60 = vld [vmem:[%s3727_s1] sm:$0xff]  ;;  %v183_v17 = vld [vmem:[%s3728_s2 + $0x108] sm:$0xff]  ;;  %v173_v30 = vrot.slane %v3274_v55, %v3306_v28  ;;  %vm2422_vm6 = vcmask 1040384   ;;  %s3131_s30 = smov [#allocation2]  }
  0x15   :  { %2931 = vmatpush3.bf16.msra.mxu0 %v2930_v32  ;;  %v182_v16 = vld [vmem:[%s3728_s2 + $0x100] sm:$0xff]  ;;  %v184_v18 = vld [vmem:[%s3728_s2 + $0x110] sm:$0xff]  ;;  %v185_v20 = vld [vmem:[%s3728_s2 + $0x118] sm:$0xff]  ;;  %v189_v42 = vrot.slane %v3274_v55, %v3324_v41  ;;  %vm2424_vm7 = vcmask 254976   ;;  %vm2529_vm8 = vcmask 58368  }
  0x16   :  { %2933 = vmatprep.subr.bf16.mxu0 %v2932_v33  ;;  %v2944_v19 = vpack.c.bf16 %v183_v17, %v182_v16  ;;  %v2948_v21 = vpack.c.bf16 %v185_v20, %v184_v18  ;;  %v179_v33 = vrot.slane %v3274_v55, %v3309_v29 }
  0x18   :  { %2945 = vmatprep.subr.bf16.mxu1 %v2944_v19 }
  0x19   :  { %2935 = vmatpush3.bf16.msra.mxu0 %v2934_v38  ;;  %2947 = vmatpush3.bf16.msra.mxu1 %v2944_v19 }
  0x1a   :  { %2937 = vmatprep.subr.bf16.mxu0 %v2936_v39  ;;  %2949 = vmatprep.subr.bf16.mxu1 %v2948_v21 }
  0x1d   :  { %2939 = vmatpush3.bf16.msra.mxu0 %v2938_v44  ;;  %2951 = vmatpush3.bf16.msra.mxu1 %v2948_v21 }
  0x1e   :  { %2941 = vmatprep.subr.bf16.mxu0 %v2940_v45  ;;  %2728 = vmatprep.subr.mxu1 %v3122_v40 }
  0x21   :  { %2943 = vmatpush3.bf16.msra.mxu0 %v2942_v48  ;;  %v3338_v48 = vand.u32 127, %v58_v52 }
  0x22   :  { %2763 = vmatprep.subr.mxu0 %v3122_v40 }
  0x23   :  { %vm141_vm3 = vcmp.lt.s32.totalorder %v3338_v48, 5 }
  0x24   :  { %127 = vmatmul.mubr.f32.vlgmr.msra.gmra.mrb[0].mxu0 %v22_v49 }
  0x25   :  { %131 = vmatprep.mubr.f32.mxu0 %v25_v50 }
  0x28   :  { %132 = vmatmul.mubr.f32.gmra.mrb[2].mxu0 %v24_v51 }
  0x29   :  { %2765 = vmatprep.mubr.msk.f32.mxu0 %vm3123_vm1, %v3122_v40 }
  0xf7   :  { %v2618_v56 = vpop.f32.mrb[0].mxu0 }
  0xf8   :  { %v2619_v58 = vpop.f32.mrb[1].mxu0 }
  0xf9   :  { %v2620_v59 = vadd.f32 %v2619_v58, %v2618_v56 }
  0xfb   :  { %v129_v61 = vadd.f32 %v2620_v59, %v61_v57  ;;  %v2621_v62 = vpop.f32.mrb[2].mxu0 }
  0xfc   :  { %v2622_v63 = vpop.f32.mrb[3].mxu0 }
  0xfd   :  { %v2623_v0 = vadd.f32 %v2622_v63, %v2621_v62  ;;  %v3281_v1 = vadd.f32 %v129_v61, %v21_v60 }
  0xff   :  { %v134_v2 = vadd.f32 %v2623_v0, %v61_v57  ;;  %v143_v3 = vsel %vm142_vm0, %v3281_v1, 0.0 }
 0x100   :  { %144 = vadd.xlane.f32.xlu0 %v143_v3 }
 0x101   :  { %v3285_v4 = vadd.f32 %v134_v2, %v21_v60 }
 0x103   :  { %v146_v5 = vsel %vm142_vm0, %v3285_v4, 0.0 }
 0x104   :  { %147 = vadd.xlane.f32.xlu0 %v146_v5 }
 0x18d   :  { %v145_v6 = vpop.xlane.xlu0 %144 }
 0x18e   :  { %v150_v7 = vmul.f32 0.03125, %v145_v6 }
 0x190   :  { %v152_v8 = vsub.f32 %v3281_v1, %v150_v7 }
 0x191   :  { %v148_v9 = vpop.xlane.xlu0 %147 }
 0x192   :  { %v151_v10 = vmul.f32 0.03125, %v148_v9  ;;  %v154_v11 = vmul.f32 %v152_v8, %v152_v8 }
 0x194   :  { %v153_v12 = vsub.f32 %v3285_v4, %v151_v10  ;;  %v156_v13 = vsel %vm142_vm0, %v154_v11, 0.0 }
 0x195   :  { %157 = vadd.xlane.f32.xlu1 %v156_v13 }
 0x196   :  { %v155_v14 = vmul.f32 %v153_v12, %v153_v12 }
 0x198   :  { %v159_v15 = vsel %vm142_vm0, %v155_v14, 0.0 }
 0x199   :  { %160 = vadd.xlane.f32.xlu1 %v159_v15 }
 0x222   :  { %v158_v22 = vpop.xlane.xlu1 %157 }
 0x223   :  { %v162_v23 = vmul.f32 0.03125, %v158_v22 }
 0x225   :  { %v164_v24 = vadd.f32 1e-12, %v162_v23 }
 0x226   :  { %v161_v25 = vpop.xlane.xlu1 %160 }
 0x227   :  { %3040 = vrsqrt.f32 %v164_v24  ;;  %v163_v26 = vmul.f32 0.03125, %v161_v25 }
 0x229   :  { %v165_v27 = vadd.f32 1e-12, %v163_v26 }
 0x22b   :  { %3042 = vrsqrt.f32 %v165_v27 }
 0x231   :  { %v3041_v31 = vpop.eup %3040 }
 0x232   :  { %v168_v32 = vmul.f32 %v3041_v31, %v152_v8 }
 0x234   :  { %v174_v34 = vmul.f32 %v173_v30, %v168_v32 }
 0x235   :  { %v3043_v35 = vpop.eup %3042 }
 0x236   :  { %v169_v36 = vmul.f32 %v3043_v35, %v153_v12  ;;  %v180_v37 = vadd.f32 %v179_v33, %v174_v34 }
 0x238   :  { %v175_v38 = vmul.f32 %v173_v30, %v169_v36  ;;  %2725 = vmatprep.mubr.msk.f32.mxu1 %vm142_vm0, %v180_v37 }
 0x23a   :  { %v181_v39 = vadd.f32 %v179_v33, %v175_v38 }
 0x23c   :  { %2726 = vmatmul.mubr.msk.f32.vlgmr.msra.gmra.mrb[0].mxu1 %vm142_vm0, %v181_v39 }
 0x23d   :  { %2730 = vmatprep.mubr.msk.f32.mxu1 %vm3123_vm1, %v3122_v40 }
 0x30f   :  { %v2727_v43 = vpop.f32.mrb[0].mxu1 }
 0x310   :  { %v3328_v44 = vadd.f32 %v2727_v43, %v189_v42  ;;  %v262_v45 = vpop.f32.mrb[1].mxu1 }
 0x311   :  { %v263_v46 = vadd.f32 %v262_v45, %v189_v42 }
 0x313   :  { %272 = vrot.lane.b32.xlu0 %v263_v46, %s3124_s19 }
 0x317   :  { %441 = vrot.lane.b32.xlu0 %v263_v46, %s3125_s20 }
 0x385   :  { %v273_v47 = vpop.permute.xlu0 %272 }
 0x386   :  { %2729 = vmatpush3.xpose.msk.msra.mxu1 %vm274_vm2, %v273_v47 }
 0x387   :  { %2733 = vmatprep.subr.mxu1 %v3122_v40 }
 0x389   :  { %2731 = vmatmul.mubr.msk.f32.vlgmr.msra.gmra.mrb[2].mxu1 %vm274_vm2, %v263_v46  ;;  %v442_v3 = vpop.permute.xlu0 %441 }
 0x38a   :  { %2735 = vmatprep.mubr.msk.f32.mxu1 %vm3123_vm1, %v3122_v40 }
 0x45c   :  { %v345_v49 = vpop.f32.mrb[2].mxu1 }
 0x45d   :  { %v349_v50 = vmul.f32 0.25, %v345_v49  ;;  %v2732_v51 = vpop.f32.mrb[3].mxu1 }
 0x45f   :  { %v350_v56 = vsel %vm141_vm3, %v349_v50, -1e+30 }
 0x460   :  { %v352_v57 = vsel %vm351_vm4, %v350_v56, -inf }
 0x461   :  { %353 = vmax.xlane.f32.xlu1 %v352_v57 }
 0x472   :  { %363 = vrot.lane.b32.xlu1 %v263_v46, %s3126_s21 }
 0x4ee   :  { %v354_v58 = vpop.xlane.xlu1 %353 }
 0x4ef   :  { %v355_v59 = vsub.f32 %v350_v56, %v354_v58 }
 0x4f1   :  { %v356_v60 = vmul.f32 1.442695, %v355_v59 }
 0x4f2   :  { %v364_v52 = vpop.permute.xlu1 %363 }
 0x4f3   :  { %3044 = vpow2.f32 %v356_v60  ;;  %2734 = vmatpush3.msra.mxu1 %v364_v52 }
 0x4f4   :  { %2738 = vmatprep.subr.mxu1 %v3122_v40 }
 0x4fd   :  { %v3045_v61 = vpop.eup %3044 }
 0x4fe   :  { %v358_v62 = vsel %vm351_vm4, %v3045_v61, 0.0 }
 0x4ff   :  { %359 = vadd.xlane.f32.xlu1 %v358_v62 }
 0x510   :  { %439 = vrot.lane.b32.xlu1 %v263_v46, %s3127_s22 }
 0x58c   :  { %v360_v63 = vpop.xlane.xlu1 %359 }
 0x58d   :  { %3046 = vrcp.f32 %v360_v63 }
 0x590   :  { %v440_v5 = vpop.permute.xlu1 %439 }
 0x597   :  { %v3047_v0 = vpop.eup %3046 }
 0x598   :  { %v362_v2 = vmul.f32 %v3047_v0, %v3045_v61 }
 0x59a   :  { %2736 = vmatmul.mubr.msk.f32.vlgmr.msra.gmra.mrb[4].mxu1 %vm351_vm4, %v362_v2 }
 0x59b   :  { %2739 = vmatpush3.xpose.msk.msra.mxu1 %vm274_vm2, %v442_v3  ;;  %2740 = vmatprep.mubr.msk.f32.mxu1 %vm3123_vm1, %v3122_v40 }
 0x59c   :  { %2743 = vmatprep.subr.mxu1 %v3122_v40 }
 0x59e   :  { %2741 = vmatmul.mubr.msk.f32.vlgmr.msra.gmra.mrb[6].mxu1 %vm274_vm2, %v440_v5 }
 0x59f   :  { %2745 = vmatprep.mubr.msk.f32.mxu1 %vm3123_vm1, %v3122_v40 }
 0x66d   :  { %v3356_v6 = vpop.f32.mrb[4].mxu1 }
 0x66e   :  { %v2737_v7 = vpop.f32.mrb[5].mxu1 }
 0x66f   :  { %v950_v7 = vld [vmem:[%s3728_s2 + $0x128] sm:$0xff] }
 0x671   :  { %v513_v8 = vpop.f32.mrb[6].mxu1 }
 0x672   :  { %v517_v9 = vmul.f32 0.25, %v513_v8  ;;  %v2742_v10 = vpop.f32.mrb[7].mxu1 }
 0x674   :  { %v518_v11 = vsel %vm141_vm3, %v517_v9, -1e+30  ;;  %v952_v9 = vld [vmem:[%s3728_s2 + $0x138] sm:$0xff] }
 0x675   :  { %v519_v12 = vsel %vm351_vm4, %v518_v11, -inf }
 0x676   :  { %520 = vmax.xlane.f32.xlu0 %v519_v12 }
 0x68c   :  { %530 = vrot.lane.b32.xlu0 %v263_v46, %s3128_s23 }
 0x703   :  { %v521_v13 = vpop.xlane.xlu0 %520 }
 0x704   :  { %v522_v14 = vsub.f32 %v518_v11, %v521_v13 }
 0x706   :  { %v523_v15 = vmul.f32 1.442695, %v522_v14 }
 0x707   :  { %v531_v16 = vpop.permute.xlu0 %530 }
 0x708   :  { %3048 = vpow2.f32 %v523_v15  ;;  %2744 = vmatpush3.msra.mxu1 %v531_v16  ;;  %v955_v15 = vsub.s32 4, %v3266_v53 }
 0x709   :  { %2748 = vmatprep.subr.mxu1 %v3122_v40 }
 0x70a   :  { %v956_v16 = vrot.slane %v3274_v55, %v955_v15 }
 0x712   :  { %v3049_v17 = vpop.eup %3048 }
 0x713   :  { %v525_v18 = vsel %vm351_vm4, %v3049_v17, 0.0 }
 0x714   :  { %526 = vadd.xlane.f32.xlu1 %v525_v18 }
 0x725   :  { %612 = vrot.lane.b32.xlu1 %v3328_v44, %s3124_s19 }
 0x7a1   :  { %v527_v19 = vpop.xlane.xlu1 %526 }
 0x7a2   :  { %3050 = vrcp.f32 %v527_v19 }
 0x7a5   :  { %v613_v22 = vpop.permute.xlu1 %612 }
 0x7ac   :  { %v3051_v20 = vpop.eup %3050 }
 0x7ad   :  { %v529_v21 = vmul.f32 %v3051_v20, %v3049_v17 }
 0x7af   :  { %2746 = vmatmul.mubr.msk.f32.vlgmr.msra.gmra.mrb[8].mxu1 %vm351_vm4, %v529_v21 }
 0x7b0   :  { %2749 = vmatpush3.xpose.msk.msra.mxu1 %vm274_vm2, %v613_v22  ;;  %2750 = vmatprep.mubr.msk.f32.mxu1 %vm3123_vm1, %v3122_v40 }
 0x7b1   :  { %2753 = vmatprep.subr.mxu1 %v3122_v40 }
 0x7b3   :  { %2751 = vmatmul.mubr.msk.f32.vlgmr.msra.gmra.mrb[10].mxu1 %vm274_vm2, %v3328_v44 }
 0x7b4   :  { %2755 = vmatprep.mubr.msk.f32.mxu1 %vm3123_vm1, %v3122_v40 }
 0x882   :  { %v602_v23 = vpop.f32.mrb[8].mxu1 }
 0x883   :  { %v2747_v24 = vpop.f32.mrb[9].mxu1 }
 0x886   :  { %v684_v25 = vpop.f32.mrb[10].mxu1 }
 0x887   :  { %v688_v26 = vmul.f32 0.25, %v684_v25  ;;  %v2752_v27 = vpop.f32.mrb[11].mxu1 }
 0x889   :  { %v689_v30 = vsel %vm141_vm3, %v688_v26, -1e+30 }
 0x88a   :  { %v690_v31 = vsel %vm351_vm4, %v689_v30, -inf }
 0x88b   :  { %691 = vmax.xlane.f32.xlu0 %v690_v31 }
 0x8a1   :  { %701 = vrot.lane.b32.xlu0 %v3328_v44, %s3126_s21 }
 0x8a5   :  { %777 = vrot.lane.b32.xlu0 %v3328_v44, %s3127_s22 }
 0x918   :  { %v692_v32 = vpop.xlane.xlu0 %691 }
 0x919   :  { %v693_v33 = vsub.f32 %v689_v30, %v692_v32 }
 0x91b   :  { %v694_v34 = vmul.f32 1.442695, %v693_v33 }
 0x91c   :  { %v702_v35 = vpop.permute.xlu0 %701 }
 0x91d   :  { %3052 = vpow2.f32 %v694_v34  ;;  %2754 = vmatpush3.msra.mxu1 %v702_v35  ;;  %v1078_v35 = vld [vmem:[%s3728_s2 + $0x140] sm:$0xff] }
 0x91e   :  { %2758 = vmatprep.subr.mxu1 %v3122_v40 }
 0x920   :  { %v778_v45 = vpop.permute.xlu0 %777 }
 0x927   :  { %v3053_v36 = vpop.eup %3052 }
 0x928   :  { %v696_v37 = vsel %vm351_vm4, %v3053_v36, 0.0 }
 0x929   :  { %697 = vadd.xlane.f32.xlu1 %v696_v37 }
 0x93a   :  { %779 = vrot.lane.b32.xlu1 %v3328_v44, %s3125_s20 }
 0x9b6   :  { %v698_v38 = vpop.xlane.xlu1 %697 }
 0x9b7   :  { %3054 = vrcp.f32 %v698_v38  ;;  %v1080_v38 = vld [vmem:[%s3728_s2 + $0x150] sm:$0xff] }
 0x9ba   :  { %v780_v43 = vpop.permute.xlu1 %779 }
 0x9c1   :  { %v3055_v39 = vpop.eup %3054 }
 0x9c2   :  { %v700_v42 = vmul.f32 %v3055_v39, %v3053_v36  ;;  %v1079_v36 = vld [vmem:[%s3728_s2 + $0x148] sm:$0xff]  ;;  %v1081_v39 = vld [vmem:[%s3728_s2 + $0x158] sm:$0xff] }
 0x9c3   :  { %v2960_v37 = vpack.c.bf16 %v1079_v36, %v1078_v35 }
 0x9c4   :  { %2756 = vmatmul.mubr.msk.f32.vlgmr.msra.gmra.mrb[12].mxu1 %vm351_vm4, %v700_v42  ;;  %v2964_v42 = vpack.c.bf16 %v1081_v39, %v1080_v38 }
 0x9c5   :  { %2759 = vmatpush3.xpose.msk.msra.mxu1 %vm274_vm2, %v780_v43  ;;  %2760 = vmatprep.mubr.msk.f32.mxu1 %vm3123_vm1, %v3122_v40 }
 0x9c8   :  { %2761 = vmatmul.mubr.msk.f32.vlgmr.msra.gmra.mrb[14].mxu1 %vm274_vm2, %v778_v45 }
 0xa97   :  { %v773_v46 = vpop.f32.mrb[12].mxu1 }
 0xa98   :  { %v2757_v47 = vpop.f32.mrb[13].mxu1 }
 0xa9b   :  { %v851_v49 = vpop.f32.mrb[14].mxu1 }
 0xa9c   :  { %v855_v50 = vmul.f32 0.25, %v851_v49  ;;  %v2762_v51 = vpop.f32.mrb[15].mxu1 }
 0xa9d   :  { %v1068_v51 = vsub.s32 5, %v3266_v53 }
 0xa9e   :  { %v856_v56 = vsel %vm141_vm3, %v855_v50, -1e+30 }
 0xa9f   :  { %v857_v57 = vsel %vm351_vm4, %v856_v56, -inf }
 0xaa0   :  { %858 = vmax.xlane.f32.xlu1 %v857_v57  ;;  %v1069_v57 = vrot.slane %v3274_v55, %v1068_v51 }
 0xab1   :  { %607 = vrot.lane.b32.xlu1 %v602_v23, %s3129_s24 }
 0xb2d   :  { %v859_v58 = vpop.xlane.xlu1 %858 }
 0xb2e   :  { %v860_v59 = vsub.f32 %v856_v56, %v859_v58  ;;  %v1074_v56 = vsub.s32 6, %v3266_v53 }
 0xb30   :  { %v861_v60 = vmul.f32 1.442695, %v860_v59 }
 0xb31   :  { %v608_v52 = vpop.permute.xlu1 %607 }
 0xb32   :  { %3056 = vpow2.f32 %v861_v60  ;;  %v610_v61 = vsel %vm274_vm2, %v3356_v6, %v608_v52  ;;  %v949_v6 = vld [vmem:[%s3728_s2 + $0x120] sm:$0xff]  ;;  %v1075_v60 = vrot.slane %v3274_v55, %v1074_v56 }
 0xb33   :  { %2776 = vmatprep.mubr.msk.f32.mxu1 %vm142_vm0, %v610_v61  ;;  %v2952_v8 = vpack.c.bf16 %v950_v7, %v949_v6  ;;  %v1187_v7 = vld [vmem:[%s3728_s2 + $0x170] sm:$0xff] }
 0xb35   :  { %2953 = vmatprep.subr.bf16.mxu1 %v2952_v8 }
 0xb36   :  { %2955 = vmatpush3.bf16.msra.mxu1 %v2952_v8 }
 0xb3c   :  { %v3057_v62 = vpop.eup %3056 }
 0xb3d   :  { %v863_v63 = vsel %vm351_vm4, %v3057_v62, 0.0 }
 0xb3e   :  { %864 = vadd.xlane.f32.xlu0 %v863_v63 }
 0xb54   :  { %868 = vrot.lane.b32.xlu0 %v3328_v44, %s3128_s23  ;;  %v951_v44 = vld [vmem:[%s3728_s2 + $0x130] sm:$0xff] }
 0xb55   :  { %v2956_v10 = vpack.c.bf16 %v952_v9, %v951_v44  ;;  %v1188_v44 = vld [vmem:[%s3728_s2 + $0x178] sm:$0xff]  ;;  %v1189_v9 = vld [vmem:[%s3728_s2 + $0x180] sm:$0xff] }
 0xb56   :  { %v2972_v8 = vpack.c.bf16 %v1188_v44, %v1187_v7  ;;  %v1322_v7 = vld [vmem:[%s3728_s2 + $0x1a8] sm:$0xff] }
 0xb57   :  { %2957 = vmatprep.subr.bf16.mxu1 %v2956_v10 }
 0xb58   :  { %2959 = vmatpush3.bf16.msra.mxu1 %v2956_v10  ;;  %v1190_v10 = vld [vmem:[%s3728_s2 + $0x188] sm:$0xff] }
 0xbcb   :  { %v865_v0 = vpop.xlane.xlu0 %864 }
 0xbcc   :  { %3058 = vrcp.f32 %v865_v0 }
 0xbcf   :  { %v869_v2 = vpop.permute.xlu0 %868 }
 0xbd0   :  { %2764 = vmatpush3.msra.mxu0 %v869_v2 }
 0xbd1   :  { %2961 = vmatprep.subr.bf16.mxu0 %v2960_v37 }
 0xbd6   :  { %v3059_v3 = vpop.eup %3058 }
 0xbd7   :  { %v867_v5 = vmul.f32 %v3059_v3, %v3057_v62  ;;  %v1185_v3 = vld [vmem:[%s3728_s2 + $0x160] sm:$0xff] }
 0xbd9   :  { %2766 = vmatmul.mubr.msk.f32.vlgmr.msra.gmra.mrb[4].mxu0 %vm351_vm4, %v867_v5  ;;  %v1186_v5 = vld [vmem:[%s3728_s2 + $0x168] sm:$0xff] }
 0xbda   :  { %2963 = vmatpush3.bf16.msra.mxu0 %v2960_v37  ;;  %v2968_v6 = vpack.c.bf16 %v1186_v5, %v1185_v3 }
 0xbdb   :  { %2965 = vmatprep.subr.bf16.mxu0 %v2964_v42 }
 0xbdc   :  { %2969 = vmatprep.subr.bf16.mxu1 %v2968_v6 }
 0xbde   :  { %2967 = vmatpush3.bf16.msra.mxu0 %v2964_v42 }
 0xcac   :  { %v940_v11 = vpop.f32.mrb[4].mxu0 }
 0xcad   :  { %945 = vrot.lane.b32.xlu1 %v940_v11, %s3129_s24  ;;  %v2767_v12 = vpop.f32.mrb[5].mxu0  ;;  %v2976_v11 = vpack.c.bf16 %v1190_v10, %v1189_v9  ;;  %v1324_v9 = vld [vmem:[%s3728_s2 + $0x1b8] sm:$0xff] }
 0xcae   :  { %v1191_v12 = vld [vmem:[%s3728_s2 + $0x190] sm:$0xff] }
 0xd1f   :  { %v946_v13 = vpop.permute.xlu1 %945 }
 0xd20   :  { %v948_v14 = vsel %vm274_vm2, %v773_v46, %v946_v13  ;;  %v1192_v13 = vld [vmem:[%s3728_s2 + $0x198] sm:$0xff] }
 0xd21   :  { %2777 = vmatmul.mubr.msk.f32.vlgmr.msra.gmra.mrb[16].mxu1 %vm142_vm0, %v948_v14  ;;  %v2980_v14 = vpack.c.bf16 %v1192_v13, %v1191_v12 }
 0xd22   :  { %2971 = vmatpush3.bf16.msra.mxu1 %v2968_v6  ;;  %v1321_v6 = vld [vmem:[%s3728_s2 + $0x1a0] sm:$0xff] }
 0xd23   :  { %2973 = vmatprep.subr.bf16.mxu1 %v2972_v8  ;;  %v2984_v44 = vpack.c.bf16 %v1322_v7, %v1321_v6 }
 0xd25   :  { %2985 = vmatprep.subr.bf16.mxu0 %v2984_v44 }
 0xd26   :  { %2975 = vmatpush3.bf16.msra.mxu1 %v2972_v8  ;;  %v1323_v8 = vld [vmem:[%s3728_s2 + $0x1b0] sm:$0xff] }
 0xd27   :  { %2977 = vmatprep.subr.bf16.mxu1 %v2976_v11  ;;  %v2988_v10 = vpack.c.bf16 %v1324_v9, %v1323_v8 }
 0xd2a   :  { %2979 = vmatpush3.bf16.msra.mxu1 %v2976_v11 }
 0xd2b   :  { %2981 = vmatprep.subr.bf16.mxu1 %v2980_v14 }
 0xd2e   :  { %2983 = vmatpush3.bf16.msra.mxu1 %v2980_v14 }
 0xd2f   :  { %2830 = vmatprep.subr.mxu1 %v3122_v40 }
 0xdf4   :  { %v2778_v17 = vpop.f32.mrb[16].mxu1 }
 0xdf5   :  { %v1035_v18 = vadd.f32 %v2778_v17, %v956_v16  ;;  %v1029_v19 = vpop.f32.mrb[17].mxu1 }
 0xdf6   :  { %v1030_v20 = vadd.f32 %v1029_v19, %v956_v16  ;;  %v1084_v16 = vsub.s32 7, %v3266_v53 }
 0xdf7   :  { %v3422_v21 = vadd.f32 %v1035_v18, %v3285_v4 }
 0xdf8   :  { %v3425_v22 = vadd.f32 %v1030_v20, %v3281_v1  ;;  %v1085_v17 = vrot.slane %v3274_v55, %v1084_v16 }
 0xdf9   :  { %v1043_v23 = vsel %vm142_vm0, %v3422_v21, 0.0 }
 0xdfa   :  { %1044 = vadd.xlane.f32.xlu1 %v1043_v23  ;;  %v1040_v24 = vsel %vm142_vm0, %v3425_v22, 0.0 }
 0xdfb   :  { %1041 = vadd.xlane.f32.xlu0 %v1040_v24 }
 0xe87   :  { %v1045_v25 = vpop.xlane.xlu1 %1044 }
 0xe88   :  { %v1047_v26 = vmul.f32 0.03125, %v1045_v25  ;;  %v1042_v27 = vpop.xlane.xlu0 %1041 }
 0xe89   :  { %v1046_v30 = vmul.f32 0.03125, %v1042_v27 }
 0xe8a   :  { %v1049_v31 = vsub.f32 %v3422_v21, %v1047_v26 }
 0xe8b   :  { %v1048_v4 = vsub.f32 %v3425_v22, %v1046_v30 }
 0xe8c   :  { %v1051_v33 = vmul.f32 %v1049_v31, %v1049_v31 }
 0xe8d   :  { %v1050_v32 = vmul.f32 %v1048_v4, %v1048_v4 }
 0xe8e   :  { %v1055_v34 = vsel %vm142_vm0, %v1051_v33, 0.0 }
 0xe8f   :  { %v1052_v1 = vsel %vm142_vm0, %v1050_v32, 0.0 }
 0xe90   :  { %1053 = vadd.xlane.f32.xlu0 %v1052_v1 }
 0xe94   :  { %1056 = vadd.xlane.f32.xlu0 %v1055_v34 }
 0xf1d   :  { %v1054_v43 = vpop.xlane.xlu0 %1053 }
 0xf1e   :  { %v1058_v45 = vmul.f32 0.03125, %v1054_v43  ;;  %v3493_v43 = vld [vmem:[%s3729_s3 + $0x8] sm:$0xff] }
 0xf20   :  { %v1060_v46 = vadd.f32 1e-12, %v1058_v45  ;;  %v1280_v45 = vrot.slane %v3493_v43, %v3269_v54 }
 0xf21   :  { %v1057_v47 = vpop.xlane.xlu0 %1056 }
 0xf22   :  { %3060 = vrsqrt.f32 %v1060_v46  ;;  %v1059_v49 = vmul.f32 0.03125, %v1057_v47 }
 0xf24   :  { %v1061_v50 = vadd.f32 1e-12, %v1059_v49 }
 0xf26   :  { %3062 = vrsqrt.f32 %v1061_v50 }
 0xf2c   :  { %v3061_v58 = vpop.eup %3060 }
 0xf2d   :  { %v1064_v59 = vmul.f32 %v3061_v58, %v1048_v4 }
 0xf2f   :  { %v1070_v52 = vmul.f32 %v1069_v57, %v1064_v59 }
 0xf30   :  { %v3063_v61 = vpop.eup %3062 }
 0xf31   :  { %v1065_v62 = vmul.f32 %v3063_v61, %v1049_v31  ;;  %v1076_v63 = vadd.f32 %v1075_v60, %v1070_v52 }
 0xf33   :  { %v1071_v0 = vmul.f32 %v1069_v57, %v1065_v62  ;;  %2787 = vmatprep.mubr.msk.f32.mxu0 %vm142_vm0, %v1076_v63 }
 0xf35   :  { %v1077_v2 = vadd.f32 %v1075_v60, %v1071_v0 }
 0xf37   :  { %2788 = vmatmul.mubr.msk.f32.vlgmr.msra.gmra.mrb[6].mxu0 %vm142_vm0, %v1077_v2 }
 0xf38   :  { %2987 = vmatpush3.bf16.msra.mxu0 %v2984_v44 }
 0xf39   :  { %2989 = vmatprep.subr.bf16.mxu0 %v2988_v10 }
 0xf3c   :  { %2991 = vmatpush3.bf16.msra.mxu0 %v2988_v10 }
 0xf3d   :  { %2820 = vmatprep.subr.mxu0 %v3122_v40 }
0x100a   :  { %v2789_v18 = vpop.f32.mrb[6].mxu0 }
0x100b   :  { %v1164_v19 = vadd.f32 %v2789_v18, %v1085_v17  ;;  %v1158_v20 = vpop.f32.mrb[7].mxu0 }
0x100c   :  { %v1159_v23 = vadd.f32 %v1158_v20, %v1085_v17 }
0x100d   :  { %v1170_v24 = vmul.f32 0.044715, %v1164_v19  ;;  %v1168_v38 = vmul.f32 0.5, %v1164_v19 }
0x100e   :  { %v1169_v25 = vmul.f32 0.044715, %v1159_v23  ;;  %v1167_v55 = vmul.f32 0.5, %v1159_v23 }
0x100f   :  { %v1172_v26 = vmul.f32 %v1170_v24, %v1164_v19 }
0x1010   :  { %v1171_v27 = vmul.f32 %v1169_v25, %v1159_v23 }
0x1011   :  { %v1174_v30 = vmul.f32 %v1172_v26, %v1164_v19  ;;  %v1318_v26 = vrot.slane %v3493_v43, %v3309_v29 }
0x1012   :  { %v1173_v31 = vmul.f32 %v1171_v27, %v1159_v23 }
0x1013   :  { %v1176_v4 = vadd.f32 %v1174_v30, %v1164_v19  ;;  %v1312_v19 = vrot.slane %v3493_v43, %v3306_v28 }
0x1014   :  { %v1175_v32 = vadd.f32 %v1173_v31, %v1159_v23 }
0x1015   :  { %v1178_v1 = vmul.f32 0.7978846, %v1176_v4 }
0x1016   :  { %v1177_v33 = vmul.f32 0.7978846, %v1175_v32  ;;  %v1328_v32 = vrot.slane %v3493_v43, %v3324_v41 }
0x1017   :  { %3064 = vtanh.f32 %v1178_v1 }
0x1018   :  { %3066 = vtanh.f32 %v1177_v33 }
0x1021   :  { %v3065_v34 = vpop.eup %3064 }
0x1022   :  { %v3067_v35 = vpop.eup %3066  ;;  %v1182_v36 = vadd.f32 1.0, %v3065_v34 }
0x1023   :  { %v1181_v37 = vadd.f32 1.0, %v3067_v35 }
0x1024   :  { %v1184_v42 = vmul.f32 %v1182_v36, %v1168_v38 }
0x1025   :  { %v1183_v39 = vmul.f32 %v1181_v37, %v1167_v55 }
0x1027   :  { %2806 = vmatprep.mubr.msk.f32.mxu1 %vm1193_vm5, %v1183_v39 }
0x1028   :  { %2807 = vmatmul.mubr.msk.f32.vlgmr.msra.gmra.mrb[18].mxu1 %vm1193_vm5, %v1184_v42 }
0x1029   :  { %2832 = vmatprep.mubr.msk.f32.mxu1 %vm3123_vm1, %v3122_v40 }
0x10fb   :  { %v2808_v46 = vpop.f32.mrb[18].mxu1 }
0x10fc   :  { %v1276_v47 = vadd.f32 %v2808_v46, %v3422_v21  ;;  %v1266_v49 = vpop.f32.mrb[19].mxu1 }
0x10fd   :  { %v1275_v50 = vadd.f32 %v1266_v49, %v3425_v22 }
0x10fe   :  { %v3499_v57 = vadd.f32 %v1280_v45, %v1276_v47 }
0x10ff   :  { %v3501_v58 = vadd.f32 %v1280_v45, %v1275_v50 }
0x1100   :  { %v1286_v59 = vsel %vm142_vm0, %v3499_v57, 0.0 }
0x1101   :  { %1287 = vadd.xlane.f32.xlu1 %v1286_v59  ;;  %v1283_v60 = vsel %vm142_vm0, %v3501_v58, 0.0 }
0x1102   :  { %1284 = vadd.xlane.f32.xlu0 %v1283_v60 }
0x118e   :  { %v1288_v52 = vpop.xlane.xlu1 %1287 }
0x118f   :  { %v1290_v61 = vmul.f32 0.03125, %v1288_v52  ;;  %v1285_v62 = vpop.xlane.xlu0 %1284 }
0x1190   :  { %v1289_v63 = vmul.f32 0.03125, %v1285_v62 }
0x1191   :  { %v1292_v21 = vsub.f32 %v3499_v57, %v1290_v61 }
0x1192   :  { %v1291_v22 = vsub.f32 %v3501_v58, %v1289_v63 }
0x1193   :  { %v1294_v0 = vmul.f32 %v1292_v21, %v1292_v21 }
0x1194   :  { %v1293_v2 = vmul.f32 %v1291_v22, %v1291_v22 }
0x1195   :  { %v1298_v3 = vsel %vm142_vm0, %v1294_v0, 0.0 }
0x1196   :  { %1299 = vadd.xlane.f32.xlu1 %v1298_v3  ;;  %v1295_v5 = vsel %vm142_vm0, %v1293_v2, 0.0 }
0x1197   :  { %1296 = vadd.xlane.f32.xlu0 %v1295_v5 }
0x1223   :  { %v1300_v11 = vpop.xlane.xlu1 %1299 }
0x1224   :  { %v1302_v12 = vmul.f32 0.03125, %v1300_v11  ;;  %v1297_v13 = vpop.xlane.xlu0 %1296 }
0x1225   :  { %v1301_v14 = vmul.f32 0.03125, %v1297_v13 }
0x1226   :  { %v1304_v17 = vadd.f32 1e-12, %v1302_v12 }
0x1227   :  { %v1303_v18 = vadd.f32 1e-12, %v1301_v14 }
0x1228   :  { %3068 = vrsqrt.f32 %v1304_v17 }
0x1229   :  { %3070 = vrsqrt.f32 %v1303_v18 }
0x1232   :  { %v3069_v20 = vpop.eup %3068 }
0x1233   :  { %v3071_v23 = vpop.eup %3070  ;;  %v1308_v24 = vmul.f32 %v3069_v20, %v1292_v21 }
0x1234   :  { %v1307_v25 = vmul.f32 %v3071_v23, %v1291_v22 }
0x1235   :  { %v1314_v27 = vmul.f32 %v1312_v19, %v1308_v24 }
0x1236   :  { %v1313_v30 = vmul.f32 %v1312_v19, %v1307_v25 }
0x1237   :  { %v1320_v4 = vadd.f32 %v1318_v26, %v1314_v27 }
0x1238   :  { %v1319_v31 = vadd.f32 %v1318_v26, %v1313_v30 }
0x123a   :  { %2817 = vmatprep.mubr.msk.f32.mxu0 %vm142_vm0, %v1319_v31 }
0x123b   :  { %2818 = vmatmul.mubr.msk.f32.vlgmr.msra.gmra.mrb[8].mxu0 %vm142_vm0, %v1320_v4 }
0x123c   :  { %2822 = vmatprep.mubr.msk.f32.mxu0 %vm3123_vm1, %v3122_v40 }
0x130e   :  { %v2819_v1 = vpop.f32.mrb[8].mxu0 }
0x130f   :  { %v1401_v33 = vpop.f32.mrb[9].mxu0  ;;  %v3540_v35 = vadd.f32 %v2819_v1, %v1328_v32 }
0x1310   :  { %v3534_v34 = vadd.f32 %v1401_v33, %v1328_v32 }
0x1312   :  { %1578 = vrot.lane.b32.xlu1 %v3534_v34, %s3125_s20  ;;  %1411 = vrot.lane.b32.xlu0 %v3534_v34, %s3124_s19 }
0x1316   :  { %1576 = vrot.lane.b32.xlu1 %v3534_v34, %s3127_s22  ;;  %1916 = vrot.lane.b32.xlu0 %v3540_v35, %s3125_s20 }
0x131a   :  { %1749 = vrot.lane.b32.xlu1 %v3540_v35, %s3124_s19 }
0x131e   :  { %1914 = vrot.lane.b32.xlu1 %v3540_v35, %s3127_s22 }
0x1384   :  { %v1579_v36 = vpop.permute.xlu1 %1578  ;;  %v1412_v55 = vpop.permute.xlu0 %1411 }
0x1385   :  { %2821 = vmatpush3.xpose.msk.msra.mxu0 %vm274_vm2, %v1412_v55  ;;  %2831 = vmatpush3.xpose.msk.msra.mxu1 %vm274_vm2, %v1579_v36 }
0x1386   :  { %2840 = vmatprep.subr.mxu1 %v3122_v40  ;;  %2825 = vmatprep.subr.mxu0 %v3122_v40 }
0x1388   :  { %v1577_v37 = vpop.permute.xlu1 %1576  ;;  %2823 = vmatmul.mubr.msk.f32.vlgmr.msra.gmra.mrb[10].mxu0 %vm274_vm2, %v3534_v34  ;;  %v1917_v39 = vpop.permute.xlu0 %1916 }
0x1389   :  { %2833 = vmatmul.mubr.msk.f32.vlgmr.msra.gmra.mrb[20].mxu1 %vm274_vm2, %v1577_v37  ;;  %2827 = vmatprep.mubr.msk.f32.mxu0 %vm3123_vm1, %v3122_v40 }
0x138a   :  { %2842 = vmatprep.mubr.msk.f32.mxu1 %vm3123_vm1, %v3122_v40 }
0x138c   :  { %v1750_v38 = vpop.permute.xlu1 %1749 }
0x138d   :  { %2841 = vmatpush3.xpose.msk.msra.mxu1 %vm274_vm2, %v1750_v38 }
0x138e   :  { %2850 = vmatprep.subr.mxu1 %v3122_v40 }
0x1390   :  { %2843 = vmatmul.mubr.msk.f32.vlgmr.msra.gmra.mrb[22].mxu1 %vm274_vm2, %v3540_v35  ;;  %v1915_v42 = vpop.permute.xlu1 %1914 }
0x1391   :  { %2851 = vmatpush3.xpose.msk.msra.mxu1 %vm274_vm2, %v1917_v39  ;;  %2852 = vmatprep.mubr.msk.f32.mxu1 %vm3123_vm1, %v3122_v40 }
0x1394   :  { %2853 = vmatmul.mubr.msk.f32.vlgmr.msra.gmra.mrb[24].mxu1 %vm274_vm2, %v1915_v42 }
0x145b   :  { %v1483_v45 = vpop.f32.mrb[10].mxu0 }
0x145c   :  { %v1487_v46 = vmul.f32 0.25, %v1483_v45  ;;  %v2824_v47 = vpop.f32.mrb[11].mxu0  ;;  %v1650_v49 = vpop.f32.mrb[20].mxu1 }
0x145d   :  { %v1654_v50 = vmul.f32 0.25, %v1650_v49  ;;  %v2834_v59 = vpop.f32.mrb[21].mxu1 }
0x145e   :  { %v1488_v60 = vsel %vm141_vm3, %v1487_v46, -1e+30  ;;  %v2086_v59 = vld [vmem:[%s3728_s2 + $0x1c0] sm:$0xff] }
0x145f   :  { %v1489_v52 = vsel %vm351_vm4, %v1488_v60, -inf  ;;  %v1655_v61 = vsel %vm141_vm3, %v1654_v50, -1e+30 }
0x1460   :  { %1490 = vmax.xlane.f32.xlu0 %v1489_v52  ;;  %v1656_v62 = vsel %vm351_vm4, %v1655_v61, -inf  ;;  %v2088_v52 = vld [vmem:[%s3728_s2 + $0x1d0] sm:$0xff] }
0x1461   :  { %1657 = vmax.xlane.f32.xlu1 %v1656_v62  ;;  %v2089_v62 = vld [vmem:[%s3728_s2 + $0x1d8] sm:$0xff] }
0x1463   :  { %v1821_v63 = vpop.f32.mrb[22].mxu1 }
0x1464   :  { %v1825_v21 = vmul.f32 0.25, %v1821_v63  ;;  %v2844_v22 = vpop.f32.mrb[23].mxu1  ;;  %v2996_v63 = vpack.c.bf16 %v2089_v62, %v2088_v52 }
0x1466   :  { %v1826_v0 = vsel %vm141_vm3, %v1825_v21, -1e+30 }
0x1467   :  { %v1988_v2 = vpop.f32.mrb[24].mxu1  ;;  %v1827_v3 = vsel %vm351_vm4, %v1826_v0, -inf }
0x1468   :  { %v1992_v5 = vmul.f32 0.25, %v1988_v2  ;;  %1828 = vmax.xlane.f32.xlu0 %v1827_v3  ;;  %v2854_v6 = vpop.f32.mrb[25].mxu1 }
0x146a   :  { %v1993_v7 = vsel %vm141_vm3, %v1992_v5, -1e+30 }
0x146b   :  { %v1994_v44 = vsel %vm351_vm4, %v1993_v7, -inf }
0x146c   :  { %1995 = vmax.xlane.f32.xlu0 %v1994_v44 }
0x14ed   :  { %v1491_v8 = vpop.xlane.xlu0 %1490 }
0x14ee   :  { %v1492_v9 = vsub.f32 %v1488_v60, %v1491_v8  ;;  %v1658_v10 = vpop.xlane.xlu1 %1657  ;;  %v2087_v60 = vld [vmem:[%s3728_s2 + $0x1c8] sm:$0xff] }
0x14ef   :  { %v1659_v11 = vsub.f32 %v1655_v61, %v1658_v10  ;;  %v2992_v61 = vpack.c.bf16 %v2087_v60, %v2086_v59 }
0x14f0   :  { %v1493_v12 = vmul.f32 1.442695, %v1492_v9 }
0x14f1   :  { %v1660_v13 = vmul.f32 1.442695, %v1659_v11  ;;  %2993 = vmatprep.subr.bf16.mxu1 %v2992_v61  ;;  %v2093_v11 = vrot.slane %v3493_v43, %v955_v15 }
0x14f2   :  { %3072 = vpow2.f32 %v1493_v12  ;;  %2995 = vmatpush3.bf16.msra.mxu1 %v2992_v61 }
0x14f3   :  { %3074 = vpow2.f32 %v1660_v13  ;;  %2997 = vmatprep.subr.bf16.mxu1 %v2996_v63 }
0x14f5   :  { %v1829_v14 = vpop.xlane.xlu0 %1828 }
0x14f6   :  { %v1830_v17 = vsub.f32 %v1826_v0, %v1829_v14  ;;  %2999 = vmatpush3.bf16.msra.mxu1 %v2996_v63 }
0x14f8   :  { %v1831_v18 = vmul.f32 1.442695, %v1830_v17 }
0x14f9   :  { %v1996_v26 = vpop.xlane.xlu0 %1995 }
0x14fa   :  { %3076 = vpow2.f32 %v1831_v18  ;;  %v1997_v27 = vsub.f32 %v1993_v7, %v1996_v26 }
0x14fc   :  { %v3073_v19 = vpop.eup %3072  ;;  %v1998_v30 = vmul.f32 1.442695, %v1997_v27 }
0x14fd   :  { %v3075_v20 = vpop.eup %3074  ;;  %v1495_v48 = vsel %vm351_vm4, %v3073_v19, 0.0 }
0x14fe   :  { %1496 = vadd.xlane.f32.xlu0 %v1495_v48  ;;  %v1662_v23 = vsel %vm351_vm4, %v3075_v20, 0.0  ;;  %3078 = vpow2.f32 %v1998_v30 }
0x14ff   :  { %1663 = vadd.xlane.f32.xlu1 %v1662_v23 }
0x1504   :  { %v3077_v24 = vpop.eup %3076 }
0x1505   :  { %v1833_v25 = vsel %vm351_vm4, %v3077_v24, 0.0 }
0x1506   :  { %1834 = vadd.xlane.f32.xlu0 %v1833_v25 }
0x1508   :  { %v3079_v31 = vpop.eup %3078 }
0x1509   :  { %v2000_v4 = vsel %vm351_vm4, %v3079_v31, 0.0 }
0x1510   :  { %1667 = vrot.lane.b32.xlu1 %v3534_v34, %s3128_s23 }
0x1514   :  { %1838 = vrot.lane.b32.xlu1 %v3540_v35, %s3126_s21 }
0x151c   :  { %1500 = vrot.lane.b32.xlu0 %v3534_v34, %s3126_s21 }
0x1538   :  { %2001 = vadd.xlane.f32.xlu1 %v2000_v4  ;;  %v2215_v4 = vld [vmem:[%s3728_s2 + $0x1e0] sm:$0xff] }
0x1549   :  { %2005 = vrot.lane.b32.xlu1 %v3540_v35, %s3128_s23 }
0x158b   :  { %v1497_v32 = vpop.xlane.xlu0 %1496 }
0x158c   :  { %3080 = vrcp.f32 %v1497_v32  ;;  %v1664_v1 = vpop.xlane.xlu1 %1663  ;;  %v2216_v32 = vld [vmem:[%s3728_s2 + $0x1e8] sm:$0xff] }
0x158d   :  { %3082 = vrcp.f32 %v1664_v1  ;;  %v3000_v1 = vpack.c.bf16 %v2216_v32, %v2215_v4 }
0x1590   :  { %v1668_v34 = vpop.permute.xlu1 %1667 }
0x1593   :  { %v1835_v33 = vpop.xlane.xlu0 %1834 }
0x1594   :  { %3084 = vrcp.f32 %v1835_v33  ;;  %v1839_v39 = vpop.permute.xlu1 %1838  ;;  %v2217_v33 = vld [vmem:[%s3728_s2 + $0x1f0] sm:$0xff] }
0x1596   :  { %v3081_v36 = vpop.eup %3080 }
0x1597   :  { %v1499_v55 = vmul.f32 %v3081_v36, %v3073_v19  ;;  %v1501_v37 = vpop.permute.xlu0 %1500  ;;  %v3083_v38 = vpop.eup %3082  ;;  %v2218_v36 = vld [vmem:[%s3728_s2 + $0x1f8] sm:$0xff] }
0x1598   :  { %2826 = vmatpush3.msra.mxu0 %v1501_v37  ;;  %v1666_v35 = vmul.f32 %v3083_v38, %v3075_v20 }
0x1599   :  { %2828 = vmatmul.mubr.msk.f32.vlgmr.msra.gmra.mrb[12].mxu0 %vm351_vm4, %v1499_v55  ;;  %2835 = vmatprep.subr.mxu0 %v3122_v40  ;;  %v3004_v55 = vpack.c.bf16 %v2218_v36, %v2217_v33 }
0x159a   :  { %2836 = vmatpush3.msra.mxu0 %v1668_v34  ;;  %2837 = vmatprep.mubr.msk.f32.mxu0 %vm3123_vm1, %v3122_v40 }
0x159b   :  { %2845 = vmatprep.subr.mxu0 %v3122_v40 }
0x159d   :  { %2838 = vmatmul.mubr.msk.f32.vlgmr.msra.gmra.mrb[14].mxu0 %vm351_vm4, %v1666_v35 }
0x159e   :  { %v3085_v42 = vpop.eup %3084  ;;  %2846 = vmatpush3.msra.mxu0 %v1839_v39  ;;  %2847 = vmatprep.mubr.msk.f32.mxu0 %vm3123_vm1, %v3122_v40 }
0x159f   :  { %v1837_v45 = vmul.f32 %v3085_v42, %v3077_v24  ;;  %2855 = vmatprep.subr.mxu0 %v3122_v40 }
0x15a1   :  { %2848 = vmatmul.mubr.msk.f32.vlgmr.msra.gmra.mrb[16].mxu0 %vm351_vm4, %v1837_v45  ;;  %v2206_v45 = vrot.slane %v3493_v43, %v1068_v51  ;;  %v2322_v51 = vld [vmem:[%s3728_s2 + $0x200] sm:$0xff] }
0x15a2   :  { %2857 = vmatprep.mubr.msk.f32.mxu0 %vm3123_vm1, %v3122_v40 }
0x15c5   :  { %v2002_v46 = vpop.xlane.xlu1 %2001 }
0x15c6   :  { %3086 = vrcp.f32 %v2002_v46 }
0x15c9   :  { %v2006_v47 = vpop.permute.xlu1 %2005 }
0x15ca   :  { %2856 = vmatpush3.msra.mxu0 %v2006_v47 }
0x15cb   :  { %3001 = vmatprep.subr.bf16.mxu0 %v3000_v1 }
0x15d0   :  { %v3087_v49 = vpop.eup %3086 }
0x15d1   :  { %v2004_v50 = vmul.f32 %v3087_v49, %v3079_v31  ;;  %v2212_v49 = vrot.slane %v3493_v43, %v1074_v56  ;;  %v2323_v56 = vld [vmem:[%s3728_s2 + $0x208] sm:$0xff] }
0x15d2   :  { %v3008_v63 = vpack.c.bf16 %v2323_v56, %v2322_v51 }
0x15d3   :  { %2858 = vmatmul.mubr.msk.f32.vlgmr.msra.gmra.mrb[18].mxu0 %vm351_vm4, %v2004_v50 }
0x15d4   :  { %3003 = vmatpush3.bf16.msra.mxu0 %v3000_v1  ;;  %3009 = vmatprep.subr.bf16.mxu1 %v3008_v63 }
0x15d5   :  { %3005 = vmatprep.subr.bf16.mxu0 %v3004_v55 }
0x15d8   :  { %3007 = vmatpush3.bf16.msra.mxu0 %v3004_v55 }
0x166c   :  { %v1572_v21 = vpop.f32.mrb[12].mxu0 }
0x166d   :  { %v2829_v22 = vpop.f32.mrb[13].mxu0 }
0x166e   :  { %v2325_v22 = vld [vmem:[%s3728_s2 + $0x218] sm:$0xff] }
0x1670   :  { %v1739_v0 = vpop.f32.mrb[14].mxu0 }
0x1671   :  { %1744 = vrot.lane.b32.xlu0 %v1739_v0, %s3129_s24  ;;  %v2839_v2 = vpop.f32.mrb[15].mxu0 }
0x1672   :  { %v2327_v2 = vld [vmem:[%s3728_s2 + $0x228] sm:$0xff] }
0x1674   :  { %v1910_v3 = vpop.f32.mrb[16].mxu0 }
0x1675   :  { %v2849_v5 = vpop.f32.mrb[17].mxu0 }
0x1676   :  { %v2328_v5 = vld [vmem:[%s3728_s2 + $0x230] sm:$0xff] }
0x16a6   :  { %v2077_v6 = vpop.f32.mrb[18].mxu0 }
0x16a7   :  { %2082 = vrot.lane.b32.xlu1 %v2077_v6, %s3129_s24  ;;  %v2859_v7 = vpop.f32.mrb[19].mxu0  ;;  %v2329_v6 = vld [vmem:[%s3728_s2 + $0x238] sm:$0xff] }
0x16a8   :  { %v3020_v7 = vpack.c.bf16 %v2329_v6, %v2328_v5 }
0x16e3   :  { %v1745_v44 = vpop.permute.xlu0 %1744 }
0x16e4   :  { %v1747_v8 = vsel %vm274_vm2, %v1572_v21, %v1745_v44  ;;  %v2324_v21 = vld [vmem:[%s3728_s2 + $0x210] sm:$0xff]  ;;  %v2222_v44 = vrot.slane %v3493_v43, %v1084_v16 }
0x16e5   :  { %2868 = vmatprep.mubr.msk.f32.mxu1 %vm142_vm0, %v1747_v8  ;;  %v3012_v0 = vpack.c.bf16 %v2325_v22, %v2324_v21 }
0x1719   :  { %v2083_v9 = vpop.permute.xlu1 %2082 }
0x171a   :  { %v2085_v10 = vsel %vm274_vm2, %v1910_v3, %v2083_v9 }
0x171b   :  { %2869 = vmatmul.mubr.msk.f32.vlgmr.msra.gmra.mrb[26].mxu1 %vm142_vm0, %v2085_v10 }
0x171c   :  { %3011 = vmatpush3.bf16.msra.mxu1 %v3008_v63 }
0x171d   :  { %3013 = vmatprep.subr.bf16.mxu1 %v3012_v0 }
0x1720   :  { %3015 = vmatpush3.bf16.msra.mxu1 %v3012_v0 }
0x17ee   :  { %v2870_v12 = vpop.f32.mrb[26].mxu1 }
0x17ef   :  { %v2172_v13 = vadd.f32 %v2870_v12, %v2093_v11  ;;  %v2166_v14 = vpop.f32.mrb[27].mxu1 }
0x17f0   :  { %v2167_v17 = vadd.f32 %v2166_v14, %v2093_v11 }
0x17f1   :  { %v3628_v18 = vadd.f32 %v2172_v13, %v3499_v57 }
0x17f2   :  { %v3631_v19 = vadd.f32 %v2167_v17, %v3501_v58 }
0x17f3   :  { %v2180_v20 = vsel %vm142_vm0, %v3628_v18, 0.0 }
0x17f4   :  { %2181 = vadd.xlane.f32.xlu1 %v2180_v20  ;;  %v2177_v48 = vsel %vm142_vm0, %v3631_v19, 0.0 }
0x17f5   :  { %2178 = vadd.xlane.f32.xlu0 %v2177_v48 }
0x1881   :  { %v2182_v23 = vpop.xlane.xlu1 %2181 }
0x1882   :  { %v2184_v15 = vmul.f32 0.03125, %v2182_v23  ;;  %v2179_v24 = vpop.xlane.xlu0 %2178 }
0x1883   :  { %v2183_v25 = vmul.f32 0.03125, %v2179_v24 }
0x1884   :  { %v2186_v26 = vsub.f32 %v3628_v18, %v2184_v15 }
0x1885   :  { %v2185_v57 = vsub.f32 %v3631_v19, %v2183_v25 }
0x1886   :  { %v2188_v30 = vmul.f32 %v2186_v26, %v2186_v26 }
0x1887   :  { %v2187_v27 = vmul.f32 %v2185_v57, %v2185_v57 }
0x1888   :  { %v2192_v31 = vsel %vm142_vm0, %v2188_v30, 0.0 }
0x1889   :  { %v2189_v58 = vsel %vm142_vm0, %v2187_v27, 0.0 }
0x188a   :  { %2190 = vadd.xlane.f32.xlu0 %v2189_v58 }
0x188e   :  { %2193 = vadd.xlane.f32.xlu0 %v2192_v31  ;;  %v20_v31 = vld [vmem:[%s3729_s3 + $0x10] sm:$0xf] }
0x188f   :  { %v2416_v4 = vrot.slane %v20_v31, %v3269_v54  ;;  %v2448_v54 = vld [vmem:[%s3728_s2 + $0x240] sm:$0xff]  ;;  %v2441_v51 = vrot.slane %v20_v31, %v3306_v28  ;;  %v2446_v63 = vrot.slane %v20_v31, %v3309_v29 }
0x1917   :  { %v2191_v34 = vpop.xlane.xlu0 %2190 }
0x1918   :  { %v2195_v37 = vmul.f32 0.03125, %v2191_v34 }
0x191a   :  { %v2197_v38 = vadd.f32 1e-12, %v2195_v37 }
0x191b   :  { %v2194_v35 = vpop.xlane.xlu0 %2193 }
0x191c   :  { %3088 = vrsqrt.f32 %v2197_v38  ;;  %v2196_v39 = vmul.f32 0.03125, %v2194_v35 }
0x191e   :  { %v2198_v42 = vadd.f32 1e-12, %v2196_v39 }
0x1920   :  { %3090 = vrsqrt.f32 %v2198_v42 }
0x1926   :  { %v3089_v46 = vpop.eup %3088 }
0x1927   :  { %v2201_v47 = vmul.f32 %v3089_v46, %v2185_v57 }
0x1929   :  { %v2207_v50 = vmul.f32 %v2206_v45, %v2201_v47 }
0x192a   :  { %v3091_v59 = vpop.eup %3090 }
0x192b   :  { %v2202_v60 = vmul.f32 %v3091_v59, %v2186_v26  ;;  %v2213_v52 = vadd.f32 %v2212_v49, %v2207_v50  ;;  %v2450_v50 = vld [vmem:[%s3728_s2 + $0x250] sm:$0xff]  ;;  %v2451_v59 = vld [vmem:[%s3728_s2 + $0x258] sm:$0xff] }
0x192d   :  { %v2208_v61 = vmul.f32 %v2206_v45, %v2202_v60  ;;  %2879 = vmatprep.mubr.msk.f32.mxu0 %vm142_vm0, %v2213_v52  ;;  %v3028_v60 = vpack.c.bf16 %v2451_v59, %v2450_v50 }
0x192f   :  { %v2214_v62 = vadd.f32 %v2212_v49, %v2208_v61  ;;  %v3130_v49 = vmov 0.0|0.0  }
0x1930   :  { %3024 = vmatprep.subr.bf16.mxu0 %v3130_v49 }
0x1931   :  { %2880 = vmatmul.mubr.msk.f32.vlgmr.msra.gmra.mrb[20].mxu0 %vm142_vm0, %v2214_v62 }
0x1932   :  { %2909 = vmatprep.mubr.msk.f32.mxu0 %vm3123_vm1, %v3122_v40  ;;  %v2326_v40 = vld [vmem:[%s3728_s2 + $0x220] sm:$0xff] }
0x1933   :  { %v3016_v3 = vpack.c.bf16 %v2327_v2, %v2326_v40  ;;  %v2455_v40 = vrot.slane %v20_v31, %v3324_v41 }
0x1935   :  { %3017 = vmatprep.subr.bf16.mxu1 %v3016_v3 }
0x1936   :  { %3019 = vmatpush3.bf16.msra.mxu1 %v3016_v3 }
0x1937   :  { %3021 = vmatprep.subr.bf16.mxu1 %v3020_v7 }
0x193a   :  { %3023 = vmatpush3.bf16.msra.mxu1 %v3020_v7 }
0x1a04   :  { %v2881_v8 = vpop.f32.mrb[20].mxu0 }
0x1a05   :  { %v2301_v9 = vadd.f32 %v2881_v8, %v2222_v44  ;;  %v2295_v10 = vpop.f32.mrb[21].mxu0 }
0x1a06   :  { %v2296_v11 = vadd.f32 %v2295_v10, %v2222_v44 }
0x1a07   :  { %v2307_v12 = vmul.f32 0.044715, %v2301_v9  ;;  %v2305_v27 = vmul.f32 0.5, %v2301_v9 }
0x1a08   :  { %v2306_v13 = vmul.f32 0.044715, %v2296_v11  ;;  %v2304_v16 = vmul.f32 0.5, %v2296_v11 }
0x1a09   :  { %v2309_v14 = vmul.f32 %v2307_v12, %v2301_v9 }
0x1a0a   :  { %v2308_v17 = vmul.f32 %v2306_v13, %v2296_v11 }
0x1a0b   :  { %v2311_v20 = vmul.f32 %v2309_v14, %v2301_v9 }
0x1a0c   :  { %v2310_v48 = vmul.f32 %v2308_v17, %v2296_v11 }
0x1a0d   :  { %v2313_v23 = vadd.f32 %v2311_v20, %v2301_v9 }
0x1a0e   :  { %v2312_v15 = vadd.f32 %v2310_v48, %v2296_v11 }
0x1a0f   :  { %v2315_v24 = vmul.f32 0.7978846, %v2313_v23 }
0x1a10   :  { %v2314_v25 = vmul.f32 0.7978846, %v2312_v15 }
0x1a11   :  { %3092 = vtanh.f32 %v2315_v24 }
0x1a12   :  { %3094 = vtanh.f32 %v2314_v25 }
0x1a1b   :  { %v3093_v26 = vpop.eup %3092 }
0x1a1c   :  { %v3095_v53 = vpop.eup %3094  ;;  %v2319_v57 = vadd.f32 1.0, %v3093_v26 }
0x1a1d   :  { %v2318_v43 = vadd.f32 1.0, %v3095_v53 }
0x1a1e   :  { %v2321_v30 = vmul.f32 %v2319_v57, %v2305_v27 }
0x1a1f   :  { %v2320_v58 = vmul.f32 %v2318_v43, %v2304_v16 }
0x1a21   :  { %2898 = vmatprep.mubr.msk.f32.mxu1 %vm1193_vm5, %v2320_v58 }
0x1a22   :  { %2899 = vmatmul.mubr.msk.f32.vlgmr.msra.gmra.mrb[28].mxu1 %vm1193_vm5, %v2321_v30 }
0x1af5   :  { %v2900_v32 = vpop.f32.mrb[28].mxu1 }
0x1af6   :  { %v2412_v1 = vadd.f32 %v2900_v32, %v3628_v18  ;;  %v2402_v33 = vpop.f32.mrb[29].mxu1  ;;  %v2449_v18 = vld [vmem:[%s3728_s2 + $0x248] sm:$0xff]  ;;  %s2537_s2 = sshll.u32 %s3131_s30, 4  ;;  %s2538_s2 = int_to_ptr.vmem [resolvable:$true] %s2537_s2 }
0x1af7   :  { %v2411_v36 = vadd.f32 %v2402_v33, %v3631_v19  ;;  %v3025_v19 = vpack.c.bf16 %v2449_v18, %v2448_v54  ;;  %s3098_s5 = scalar_lea.vmem %s2538_s2, 32  ;;  %p3103_p1 = scmp.lt.s32.totalorder %s2538_s2, %s2538_s2 }
0x1af8   :  { %v2418_v55 = vadd.f32 %v2416_v4, %v2412_v1  ;;  %p3099_p0 = scmp.ne.s32.totalorder %s2538_s2, %s3098_s5  ;;  %p3104_p2 = scmp.lt.s32.totalorder %s3098_s5, %s3098_s5 }
0x1af9   :  { %v2417_v34 = vadd.f32 %v2416_v4, %v2411_v36  ;;  %3026 = vmatpush3.bf16.msra.mxu0 %v3025_v19 }
0x1afa   :  { %v2420_v37 = vrot.slane %v2418_v55, 7  ;;  %3027 = vmatprep.subr.bf16.mxu0 %v3130_v49  ;;  %p3105_p3 = por %p3104_p2, %p3103_p1 }
0x1afc   :  { %v2423_v38 = vsel %vm2422_vm6, %v2417_v34, %v2420_v37  ;;  %p3106_p4 = pnand %p3105_p3, %p3099_p0 }
0x1afd   :  { %v2425_v35 = vsel %vm2424_vm7, %v2423_v38, 0.0  ;;  %3029 = vmatpush3.bf16.msra.mxu0 %v3028_v60 }
0x1afe   :  { %2426 = vadd.xlane.f32.xlu0 %v2425_v35 }
0x1b8b   :  { %v2427_v39 = vpop.xlane.xlu0 %2426 }
0x1b8c   :  { %v2428_v42 = vmul.f32 0.03125, %v2427_v39 }
0x1b8e   :  { %v2429_v45 = vsub.f32 %v2423_v38, %v2428_v42 }
0x1b90   :  { %v2430_v46 = vmul.f32 %v2429_v45, %v2429_v45 }
0x1b92   :  { %v2431_v47 = vsel %vm2424_vm7, %v2430_v46, 0.0 }
0x1b93   :  { %2432 = vadd.xlane.f32.xlu1 %v2431_v47 }
0x1c20   :  { %v2433_v52 = vpop.xlane.xlu1 %2432 }
0x1c21   :  { %v2434_v61 = vmul.f32 0.03125, %v2433_v52 }
0x1c23   :  { %v2435_v62 = vadd.f32 1e-12, %v2434_v61 }
0x1c25   :  { %3096 = vrsqrt.f32 %v2435_v62 }
0x1c2f   :  { %v3097_v56 = vpop.eup %3096 }
0x1c30   :  { %v2437_v21 = vmul.f32 %v3097_v56, %v2429_v45 }
0x1c32   :  { %v2442_v22 = vmul.f32 %v2441_v51, %v2437_v21 }
0x1c34   :  { %v2447_v0 = vadd.f32 %v2446_v63, %v2442_v22 }
0x1c36   :  { %2910 = vmatmul.mubr.msk.f32.vlgmr.msra.gmra.mrb[22].mxu0 %vm142_vm0, %v2447_v0 }
0x1d09   :  { %v2525_v2 = vpop.f32.mrb[22].mxu0 }
0x1d0a   :  { %v2526_v3 = vadd.f32 %v2525_v2, %v2455_v40  ;;  %v2911_v5 = vpop.f32.mrb[23].mxu0 }
0x1d0c   :  { %2530 = vst.msk [vmem:[#allocation2] sm:$0x3] %vm2529_vm8, %v2526_v3 }
0x1d0d   :  { %3109 = shalt.err (!%p3106_p4)
}
0x1d0e   :  { %s3110_s8 = scalar_lea.hbm %s3730_s4, 32 }
0x1d0f   :  { %p3111_p5 = scmp.ne.s32.totalorder %s3730_s4, %s3110_s8  ;;  %p3114_p6 = scmp.lt.u32.totalorder %s3110_s8, %s3730_s4 }
0x1d11   :  { %p3116_p7 = pnand %p3114_p6, %p3111_p5 }
0x1d13   :  { %3119 = shalt.err (!%p3116_p7)
}
0x1d14   :  { %2540 = dma.vmem_to_hbm [thread:$0]  %s2538_s2, 32, %s3730_s4, [#allocation3]  }
0x1d15   :  { %3120 = dma.done.wait [#allocation3], 32  }
0x1d16   :  { %3121 = vsyncadd [#allocation3], 4294967264 }
0x1d17   :  { %2544 = vsyncpa [#allocation3], 1 }

</bundles_post_ra>
